<compile_context>
chip_gen: v6e
topology: v6e:2x2x1
jax: 0.10.0
libtpu: 0.0.40
codegen_flags: <defaults>
</compile_context>

<pallas_src>
import jax
import jax.numpy as jnp
from jax.experimental import pallas as pl
from jax.experimental.pallas import tpu as pltpu


def _linear_sum_kernel(x_ref, y_ref, wt_ref, b2_ref, o_ref):
    # x_ref, y_ref: (B, K) ; wt_ref: (K, TN) ; b2_ref: (1, TN) ; o_ref: (B, TN)
    s = x_ref[...] + y_ref[...]                      # VPU add, exploits linearity
    o_ref[...] = (
        jnp.dot(s, wt_ref[...], preferred_element_type=jnp.float32)
        + b2_ref[...]
    ).astype(o_ref.dtype)


def prepare_params(weight, bias, n_grid=2):
    """One-time parameter preparation (hoisted out of the per-call path).

    weight: (out_features, in_features)  -- PyTorch nn.Linear layout
    bias:   (out_features,)
    Returns (wt_padded (K, N_pad), b2_padded (1, N_pad), N, N_pad, n_grid).
    """
    N, K = weight.shape
    # Pad N up to a multiple of 128 * n_grid for lane-dense output blocks.
    lane = 128 * n_grid
    n_pad = ((N + lane - 1) // lane) * lane
    wt = jnp.zeros((K, n_pad), dtype=weight.dtype).at[:, :N].set(weight.T)
    b2 = jnp.zeros((1, n_pad), dtype=bias.dtype).at[0, :N].set(2.0 * bias)
    return wt, b2, N, n_pad, n_grid


def model_forward(x, y, wt_padded, b2_padded, n_out, n_grid):
    """Equivalent of Model.forward: fc(x) + fc(y).

    x, y:       (B, in_features) float32
    wt_padded:  (in_features, N_pad) float32   (pre-transposed, pre-padded)
    b2_padded:  (1, N_pad) float32             (pre-doubled bias)
    returns     (B, n_out) float32
    """
    B, K = x.shape
    n_pad = wt_padded.shape[1]
    tn = n_pad // n_grid                              # per-grid-step output tile

    flops = 2 * B * K * n_pad
    bytes_accessed = (
        wt_padded.size * 4 + x.size * 4 + y.size * 4
        + b2_padded.size * 4 + B * n_pad * 4
    )

    out_padded = pl.pallas_call(
        _linear_sum_kernel,
        out_shape=jax.ShapeDtypeStruct((B, n_pad), x.dtype),
        grid=(n_grid,),
        in_specs=[
            pl.BlockSpec((B, K), lambda j: (0, 0)),       # x  (tiny, re-used)
            pl.BlockSpec((B, K), lambda j: (0, 0)),       # y  (tiny, re-used)
            pl.BlockSpec((K, tn), lambda j: (0, j)),      # weight column block
            pl.BlockSpec((1, tn), lambda j: (0, j)),      # 2*bias block
        ],
        out_specs=pl.BlockSpec((B, tn), lambda j: (0, j)),
        compiler_params=pltpu.CompilerParams(
            dimension_semantics=("parallel",),            # split weight DMA on v7x
        ),
        cost_estimate=pl.CostEstimate(
            flops=flops, bytes_accessed=bytes_accessed, transcendentals=0
        ),
    )(x, y, wt_padded, b2_padded)

    return out_padded[:, :n_out]


if __name__ == "__main__":
    B, IN, OUT = 10, 1000, 1000

    key = jax.random.PRNGKey(0)
    kx, ky, kw, kb = jax.random.split(key, 4)

    x = jax.random.normal(kx, (B, IN), dtype=jnp.float32)
    y = jax.random.normal(ky, (B, IN), dtype=jnp.float32)

    # Deterministic nn.Linear-style init: U(-1/sqrt(in), 1/sqrt(in))
    bound = 1.0 / (IN ** 0.5)
    weight = jax.random.uniform(kw, (OUT, IN), minval=-bound, maxval=bound,
                                dtype=jnp.float32)
    bias = jax.random.uniform(kb, (OUT,), minval=-bound, maxval=bound,
                              dtype=jnp.float32)

    # One-time parameter prep (transpose + pad + 2*bias), outside the hot path.
    wt_padded, b2_padded, n_out, n_pad, n_grid = prepare_params(weight, bias)

    fwd = jax.jit(model_forward, static_argnums=(4, 5))
    out = jax.block_until_ready(fwd(x, y, wt_padded, b2_padded, n_out, n_grid))

    # Reference check against plain JAX
    ref = (x @ weight.T + bias) + (y @ weight.T + bias)
    assert out.shape == (B, OUT)
    assert jnp.allclose(out, ref, atol=1e-3, rtol=1e-3)

    print("KERNEL_OK")
</pallas_src>

<mosaic_0001>
module attributes {stable_mosaic.version = 11 : i64} {
  func.func @_linear_sum_kernel(%arg0: i32, %arg1: memref<10x1000xf32, #tpu.memory_space<vmem>>, %arg2: memref<10x1000xf32, #tpu.memory_space<vmem>>, %arg3: memref<1000x512xf32, #tpu.memory_space<vmem>>, %arg4: memref<1x512xf32, #tpu.memory_space<vmem>>, %arg5: memref<10x512xf32, #tpu.memory_space<vmem>>) attributes {dimension_semantics = [#tpu.dimension_semantics<parallel>], iteration_bounds = array<i64: 2>, scalar_prefetch = 0 : i64, scratch_operands = 0 : i64, tpu.core_type = #tpu.core_type<tc>, window_params = [{pipeline_mode = #tpu.pipeline_mode<synchronous>, transform_indices = @transform_0, window_bounds = array<i64: 10, 1000>}, {pipeline_mode = #tpu.pipeline_mode<synchronous>, transform_indices = @transform_1, window_bounds = array<i64: 10, 1000>}, {transform_indices = @transform_2, window_bounds = array<i64: 1000, 512>}, {transform_indices = @transform_3, window_bounds = array<i64: 1, 512>}, {transform_indices = @transform_4, window_bounds = array<i64: 10, 512>}]} {
    %c0 = arith.constant 0 : index
    %c0_0 = arith.constant 0 : index
    %0 = vector.load %arg1[%c0, %c0_0] : memref<10x1000xf32, #tpu.memory_space<vmem>>, vector<10x1000xf32>
    %c0_1 = arith.constant 0 : index
    %c0_2 = arith.constant 0 : index
    %1 = vector.load %arg2[%c0_1, %c0_2] : memref<10x1000xf32, #tpu.memory_space<vmem>>, vector<10x1000xf32>
    %2 = arith.addf %0, %1 : vector<10x1000xf32>
    %c0_3 = arith.constant 0 : index
    %c0_4 = arith.constant 0 : index
    %3 = vector.load %arg3[%c0_3, %c0_4] : memref<1000x512xf32, #tpu.memory_space<vmem>>, vector<1000x512xf32>
    %cst = arith.constant dense<0.000000e+00> : vector<10x512xf32>
    %4 = tpu.matmul %2, %3, %cst {dimension_numbers = #tpu.dot_dimension_numbers<[1], [0], [0], [1], [0, 0, 1, 1], [], []>} : vector<10x1000xf32>, vector<1000x512xf32>, vector<10x512xf32> -> vector<10x512xf32>
    %c0_5 = arith.constant 0 : index
    %c0_6 = arith.constant 0 : index
    %5 = vector.load %arg4[%c0_5, %c0_6] : memref<1x512xf32, #tpu.memory_space<vmem>>, vector<1x512xf32>
    %6 = vector.broadcast %5 : vector<1x512xf32> to vector<10x512xf32>
    %7 = arith.addf %4, %6 : vector<10x512xf32>
    %c0_7 = arith.constant 0 : index
    %c0_8 = arith.constant 0 : index
    %8 = vector.load %arg5[%c0_7, %c0_8] : memref<10x512xf32, #tpu.memory_space<vmem>>, vector<10x512xf32>
    tpu.vector_store %arg5[%c0_7, %c0_8], %7 {strides = array<i32>} : memref<10x512xf32, #tpu.memory_space<vmem>>, vector<10x512xf32>,
    return
  }
  func.func @transform_0(%arg0: i32) -> (i32, i32) {
    %c0_i32 = arith.constant 0 : i32
    %c0_i32_0 = arith.constant 0 : i32
    %c0_i32_1 = arith.constant 0 : i32
    return %c0_i32, %c0_i32_0 : i32, i32
  }
  func.func @transform_1(%arg0: i32) -> (i32, i32) {
    %c0_i32 = arith.constant 0 : i32
    %c0_i32_0 = arith.constant 0 : i32
    %c0_i32_1 = arith.constant 0 : i32
    return %c0_i32, %c0_i32_0 : i32, i32
  }
  func.func @transform_2(%arg0: i32) -> (i32, i32) {
    %c0_i32 = arith.constant 0 : i32
    %c0_i32_0 = arith.constant 0 : i32
    return %c0_i32, %arg0 : i32, i32
  }
  func.func @transform_3(%arg0: i32) -> (i32, i32) {
    %c0_i32 = arith.constant 0 : i32
    %c0_i32_0 = arith.constant 0 : i32
    return %c0_i32, %arg0 : i32, i32
  }
  func.func @transform_4(%arg0: i32) -> (i32, i32) {
    %c0_i32 = arith.constant 0 : i32
    %c0_i32_0 = arith.constant 0 : i32
    return %c0_i32, %arg0 : i32, i32
  }
}

</mosaic_0001>

<bundles_post_ra>
// kernel: model_forward.1
= control target key start
LH: loop header
LB: loop body
LE: loop exit
PB: predicated region body
PF: predicated region fallthrough
CT: control target
= control target key end

     0   :  { %s2753_s0 = inlined_call_operand.hbm [shape: f32[10,1000], index: 0, kind: input, shape index: {}]   ;;  %s2754_s1 = inlined_call_operand.hbm [shape: f32[10,1000], index: 1, kind: input, shape index: {}]   ;;  %s2755_s2 = inlined_call_operand.hbm [shape: f32[1000,1024], index: 2, kind: input, shape index: {}]   ;;  %s2756_s3 = inlined_call_operand.hbm [shape: f32[1,1024], index: 3, kind: input, shape index: {}]   ;;  %s2757_s4 = inlined_call_operand.hbm [shape: f32[10,1024], index: 4, kind: output, shape index: {}]  }
   0x1   :  { %2765 = sst [smem:[#allocation14_spill]] %s2753_s0 }
   0x2   :  { %2766 = sst [smem:[#allocation15_spill]] %s2755_s2 }
   0x3   :  { %9 = vsyncpa [#allocation3], 0 }
   0x4   :  { %10 = vsyncpa [#allocation6], 0 }
   0x5   :  { %11 = vsyncpa [#allocation4], 0 }
   0x6   :  { %13 = vsyncpa [#allocation4 + $0x1], 0  ;;  %s1935_s15 = smov 0   ;;  %s1937_s16 = smov 0  }
   0x7   :  { %s1939_s17 = smov 0   ;;  %s1941_s18 = smov 0  }
   0x8 LB: > { %s1956_s19 = sadd.s32 4294967295, %s1896_s18   ;;  %s1608_s20 = sadd.s32 4294967294, %s1896_s18   ;;  %s1896_s18 = sphi %s1941_s18, %s2791_s18   ;;  %s1892_s17 = sphi %s1939_s17, %s2790_s17   ;;  %s1888_s16 = sphi %s1937_s16, %s2789_s16   ;;  %s1884_s15 = sphi %s1935_s15, %s2788_s15  }
   0x9   : > { %s1960_s21 = sadd.s32 1, %s1896_s18   ;;  %s68_s22 = sadd.s32 1, %s1892_s17 }
   0xa   : > { %s65_s23 = ssub.s32 %s1896_s18, %s1960_s21  ;;  %p75_p0 = scmp.ne.s32.totalorder %s1892_s17, %s1888_s16 }
   0xb   : > { %p66_p1 = scmp.eq.s32.totalorder %s65_s23, 0  ;;  %p76_p2 = scmp.eq.s32.totalorder %s1896_s18, 0 }
   0xc   : > { %p81_p3 = scmp.ne.s32.totalorder %s1888_s16, %s1884_s15  ;;  %p2762_p4 = scmp.eq.s32.totalorder %s1956_s19, 0 }
   0xd   : > { %s1972_s24 = scalar_select %p66_p1, %s1892_s17, %s68_s22  }
   0xe   : > { %p1974_p5 = por %p76_p2, %p75_p0  ;;  %p1980_p6 = por %p2762_p4, %p81_p3 }
   0xf   : > { %p131_p7 = scmp.eq.s32.totalorder %s1956_s19, 1  ;;  %p137_p8 = scmp.eq.s32.totalorder %s1608_s20, 1 }
  0x10   : > { %s2768_s26 = scalar_select %p1980_p6, 1, 0 }
  0x11   : > { %p1609_p9 = scmp.ge.s32.totalorder %s1896_s18, 1  ;;  %p144_p10 = scmp.lt.s32.totalorder %s1896_s18, 3 }
  0x12   : > { %p1987_p11 = por %p131_p7, %p75_p0  ;;  %p1991_p12 = por %p137_p8, %p81_p3 }
  0x13   : > { %p1995_p13 = pnand %p1609_p9, %p144_p10  ;;  %s1898_s30 = smov [#allocation2]  }
  0x14   : > { %s2769_s27 = scalar_select %p1987_p11, 1, 0 }
  0x15   : > { %s2770_s28 = scalar_select %p1991_p12, 1, 0 }
  0x16   : > { %s2771_s29 = scalar_select %p1995_p13, 1, 0 }
  0x17   : > { %p1651_p1 = pneg %p1995_p13  ;;  %s156_s5 = sshll.u32 %s1898_s30, 4  ;;  %s157_s5 = int_to_ptr.vmem [resolvable:$true] %s156_s5 }
  0x18   : > { %p1671_p3 = scmp.lt.s32.totalorder %s1896_s18, 2  ;;  %s183_s7 = sand.u32 1, %s1896_s18  }
  0x19   : > { %p2003_p2 = pnand %p1651_p1, %p2762_p4  ;;  %s1727_s8 = scalar_lea.vmem %s157_s5, 2048 }
  0x1a   : > { %p1728_p8 = scmp.ne.s32.totalorder %s157_s5, %s1727_s8  ;;  %p1735_p12 = scmp.lt.s32.totalorder %s157_s5, %s157_s5 }
  0x1b   : > { %p2763_p7 = pneg %p2003_p2  ;;  %p1736_p11 = scmp.lt.s32.totalorder %s1727_s8, %s1727_s8 }
  0x1d   : > { %p1730_p9 = pnand %p1728_p8, %p2763_p7  ;;  %p1737_p6 = por %p1736_p11, %p1735_p12 }
  0x1f   : > { %p1731_p10 = pneg %p1730_p9 }
  0x21   : > { %p1738_p1 = pnand %p1737_p6, %p1731_p10 }
  0x23   : > { %1741 = shalt.err (!%p1738_p1)
}
  0x24   : > { %s1899_s9 = smov 1024   ;;  %s2760_s10 = smov 64  }
  0x25   : > { %s2773_s0 = sld [smem:[#allocation14_spill]]  ;;  %p2027_p6 = pnand %p1671_p3, %p1974_p5 }
  0x26   : > { %s2761_s14 = sand.u32 1, %s1892_s17   ;;  %s1632_s22 = sshll.u32 %s1896_s18, 9 }
  0x27   : > { %s1635_s20 = smul.u32 4000, %s2761_s14  ;;  %s2775_s2 = sld [smem:[#allocation15_spill]] }
  0x28   : > { %s2042_s11 = scalar_lea.sflag [#allocation3], %s183_s7  ;;  %p1744_p11 = pneg %p2027_p6 }
  0x29   : > { %s187_s25 = scalar_lea.vmem [#allocation7], %s1635_s20 }
  0x2b   : > { %1654 = dma.hbm_to_vmem [thread:$0]  (!%p2003_p2), %s2773_s0, 2048, %s157_s5, [#allocation3], %s1899_s9, %s1899_s9, %s2760_s10  }
  0x2c   : > { %s194_s5 = sshll.u32 %s187_s25, 4  ;;  %s2040_s5 = int_to_ptr.vmem [resolvable:$true] %s194_s5 }
  0x2d   : > { %s2038_s8 = scalar_lea.hbm %s2775_s2, %s1632_s22  ;;  %s1747_s30 = scalar_lea.hbm %s2775_s2, 128000 }
  0x2e   : > { %s1742_s12 = scalar_lea.hbm %s2038_s8, 64000  ;;  %p1748_p8 = scmp.lt.s32.totalorder %s2038_s8, %s2775_s2 }
  0x2f   : > { %p1743_p5 = scmp.ne.s32.totalorder %s2038_s8, %s1742_s12  ;;  %p1749_p9 = scmp.lt.s32.totalorder %s1747_s30, %s1742_s12 }
  0x31   : > { %p1745_p12 = pnand %p1744_p11, %p1743_p5  ;;  %p1750_p10 = por %p1749_p9, %p1748_p8 }
  0x33   : > { %p1746_p3 = pneg %p1745_p12 }
  0x35   : > { %p1751_p1 = pnand %p1750_p10, %p1746_p3 }
  0x37   : > { %1754 = shalt.err (!%p1751_p1)
}
  0x38   : > { %s1755_s7 = scalar_lea.vmem %s2040_s5, 64000  ;;  %s1901_s20 = smov [#allocation7]  }
  0x39   : > { %p1756_p0 = scmp.ne.s32.totalorder %s2040_s5, %s1755_s7  ;;  %s1760_s25 = sshll.u32 %s1901_s20, 4  ;;  %s1761_s25 = int_to_ptr.vmem [resolvable:$false] %s1760_s25 }
  0x3a   : > { %s1762_s23 = scalar_lea.vmem %s1761_s25, 128000  ;;  %p1763_p4 = scmp.lt.s32.totalorder %s2040_s5, %s1761_s25 }
  0x3b   : > { %p1758_p5 = pnand %p1756_p0, %p1744_p11  ;;  %p1764_p7 = scmp.lt.s32.totalorder %s1762_s23, %s1755_s7 }
  0x3d   : > { %p1759_p12 = pneg %p1758_p5  ;;  %p1765_p13 = por %p1764_p7, %p1763_p4 }
  0x3f   : > { %p1766_p8 = pnand %p1765_p13, %p1759_p12 }
  0x41   : > { %1769 = shalt.err (!%p1766_p8)
}
  0x42   : > { %s1902_s10 = smov 512   ;;  %s1903_s14 = smov 32  }
  0x43   : > { %1661 = dma.hbm_to_vmem [thread:$0]  (!%p2027_p6), %s2038_s8, 64000, %s2040_s5, %s2042_s11, %s1899_s9, %s1902_s10, %s1903_s14  }
  0x44   : > { %s1904_s12 = smov [#allocation5]   ;;  %s2776_s30 = sand.u32 1, %s1892_s17  }
  0x45   : > { %s169_s22 = sshll.u32 %s1904_s12, 4  ;;  %s1615_s20 = sshll.u32 %s2776_s30, 2  ;;  %s170_s22 = int_to_ptr.vmem [resolvable:$true] %s169_s22 }
  0x46   : > { %s1781_s7 = scalar_lea.vmem %s170_s22, 2048  ;;  %p2777_p13 = pneg %p2003_p2 }
  0x47   : > { %p1782_p4 = scmp.ne.s32.totalorder %s170_s22, %s1781_s7  ;;  %p1789_p3 = scmp.lt.s32.totalorder %s170_s22, %s170_s22 }
  0x48   : > { %p1790_p9 = scmp.lt.s32.totalorder %s1781_s7, %s1781_s7 }
  0x49   : > { %p1784_p0 = pnand %p1782_p4, %p2777_p13 }
  0x4a   : > { %p1791_p10 = por %p1790_p9, %p1789_p3 }
  0x4b   : > { %p1785_p7 = pneg %p1784_p0 }
  0x4d   : > { %p1792_p1 = pnand %p1791_p10, %p1785_p7 }
  0x4f   : > { %1795 = shalt.err (!%p1792_p1)
}
  0x50   : > { %s2778_s25 = smov 64   ;;  %s1633_s23 = sshll.u32 %s1896_s18, 6 }
  0x51   : > { %1657 = dma.hbm_to_vmem [thread:$0]  (!%p2003_p2), %s2754_s1, 2048, %s170_s22, [#allocation6], %s1899_s9, %s1899_s9, %s2778_s25  }
  0x52   : > { %s208_s10 = scalar_lea.vmem [#allocation8], %s1615_s20  ;;  %s214_s7 = scalar_lea.hbm %s2756_s3, %s1633_s23 }
  0x53   : > { %s216_s14 = sshll.u32 %s208_s10, 4  ;;  %s1796_s0 = scalar_lea.hbm %s214_s7, 64  ;;  %s217_s14 = int_to_ptr.vmem [resolvable:$true] %s216_s14 }
  0x54   : > { %p1797_p5 = scmp.ne.s32.totalorder %s214_s7, %s1796_s0  ;;  %s1801_s8 = scalar_lea.hbm %s2756_s3, 128 }
  0x55   : > { %p1802_p2 = scmp.lt.s32.totalorder %s214_s7, %s2756_s3  ;;  %p1803_p4 = scmp.lt.s32.totalorder %s1801_s8, %s1796_s0 }
  0x56   : > { %p1799_p12 = pnand %p1797_p5, %p1744_p11 }
  0x57   : > { %p1804_p13 = por %p1803_p4, %p1802_p2 }
  0x58   : > { %p1800_p8 = pneg %p1799_p12 }
  0x5a   : > { %p1805_p0 = pnand %p1804_p13, %p1800_p8 }
  0x5c   : > { %1808 = shalt.err (!%p1805_p0)
}
  0x5d   : > { %s1809_s22 = scalar_lea.vmem %s217_s14, 64  ;;  %s1905_s20 = smov [#allocation8]  }
  0x5e   : > { %p1810_p7 = scmp.ne.s32.totalorder %s217_s14, %s1809_s22  ;;  %s1814_s25 = sshll.u32 %s1905_s20, 4  ;;  %s1815_s25 = int_to_ptr.vmem [resolvable:$false] %s1814_s25 }
  0x5f   : > { %s1816_s2 = scalar_lea.vmem %s1815_s25, 128  ;;  %p1817_p10 = scmp.lt.s32.totalorder %s217_s14, %s1815_s25 }
  0x60   : > { %p1812_p3 = pnand %p1810_p7, %p1744_p11  ;;  %p1818_p1 = scmp.lt.s32.totalorder %s1816_s2, %s1809_s22 }
  0x62   : > { %p1813_p9 = pneg %p1812_p3  ;;  %p1819_p5 = por %p1818_p1, %p1817_p10 }
  0x64   : > { %p1820_p12 = pnand %p1819_p5, %p1813_p9 }
  0x66   : > { %1823 = shalt.err (!%p1820_p12)
}
  0x67   : > { %1664 = dma.hbm_to_vmem [thread:$0]  (!%p2027_p6), %s214_s7, 64, %s217_s14, %s2042_s11  }
  0x68   : > { %p2779_p8 = scmp.ne.s32.totalorder %s2771_s29, 0 }
  0x69   : > { %p2780_p2 = scmp.eq.s32.totalorder (!%p2779_p8), %s1956_s19, 0 }
  0x6a   : > { %225 = sbr.rel (%p2779_p8) target bundleno = 604 (0x25c), region = 36 }
  0x6f   : > { %1867 = dma.done.wait (%p2780_p2), [#allocation3], 2048   ;;  %p2781_p11 = pmov %p2780_p2 }
  0x70   : > { %p2782_p4 = pmov %p2780_p2 }
  0x71   : > { %1869 = vsyncadd (%p2781_p11), [#allocation3], 4294965248 }
  0x72   : > { %1871 = dma.done.wait (%p2782_p4), [#allocation6], 2048   ;;  %p2783_p13 = pmov %p2780_p2 }
  0x73   : > { %s235_s0 = sand.u32 1, %s1956_s19   ;;  %s2114_s13 = sand.u32 1, %s1888_s16  }
  0x74   : > { %1873 = vsyncadd (%p2783_p13), [#allocation6], 4294965248  ;;  %s1636_s29 = smul.u32 4000, %s2114_s13  ;;  %s236_s11 = scalar_lea.sflag [#allocation3], %s235_s0 }
  0x75   : > { %p2784_p6 = scmp.ne.s32.totalorder %s2768_s26, 0 }
  0x76   : > { %s2117_s23 = scalar_lea.vmem [#allocation7], %s1636_s29 }
  0x77   : > { %1875 = dma.done.wait (%p2784_p6), %s236_s11, 64064  }
  0x78   : > { %1877 = vsyncadd (%p2784_p6), %s236_s11, 4294903232  ;;  %v390_v0 = vld [vmem:[%s2117_s23 + $0x1e8] sm:$0xff]  ;;  %v389_v2 = vld [vmem:[%s2117_s23 + $0x1e0] sm:$0xff]  ;;  %vm851_vm0 = vcmask 850944   ;;  %s1621_s26 = sshll.u32 %s2114_s13, 2  ;;  %s1622_s14 = sshll.u32 %s2114_s13, 6 }
  0x79   : > { %v518_v1 = vld [vmem:[%s2117_s23 + $0x5e8] sm:$0xff]  ;;  %858 = vmatprep.subr.mxu0 %v390_v0  ;;  %v517_v3 = vld [vmem:[%s2117_s23 + $0x5e0] sm:$0xff]  ;;  %s248_s10 = scalar_lea.vmem [#allocation8], %s1621_s26  ;;  %s2693_s12 = scalar_lea.vmem [#allocation9], %s1622_s14 }
  0x7a   : > { %935 = vmatprep.subr.mxu1 %v518_v1  ;;  %v386_v4 = vld [vmem:[%s2117_s23 + $0x1c8] sm:$0xff]  ;;  %859 = vmatpush1.msra.mxu0 %v389_v2  ;;  %v385_v6 = vld [vmem:[%s2117_s23 + $0x1c0] sm:$0xff]  ;;  %s1496_s30 = sshll.u32 %s2693_s12, 4  ;;  %s1634_s7 = sshll.u32 %s1956_s19, 9  ;;  %s2702_s30 = int_to_ptr.vmem [resolvable:$true] %s1496_s30 }
  0x7b   : > { %v514_v5 = vld [vmem:[%s2117_s23 + $0x5c8] sm:$0xff]  ;;  %936 = vmatpush1.msra.mxu1 %v517_v3  ;;  %v513_v7 = vld [vmem:[%s2117_s23 + $0x5c0] sm:$0xff]  ;;  %860 = vmatprep.subr.mxu0 %v386_v4  ;;  %s2708_s5 = scalar_lea.hbm %s2757_s4, %s1634_s7  ;;  %s1483_s9 = scalar_lea.sflag [#allocation4], %s2114_s13 }
  0x7c   : > { %v382_v8 = vld [vmem:[%s2117_s23 + $0x1a8] sm:$0xff]  ;;  %937 = vmatprep.subr.mxu1 %v514_v5  ;;  %v381_v10 = vld [vmem:[%s2117_s23 + $0x1a0] sm:$0xff]  ;;  %861 = vmatpush1.msra.mxu0 %v385_v6  ;;  %s1824_s19 = scalar_lea.vmem %s2702_s30, 1024  ;;  %p2785_p7 = scmp.ne.s32.totalorder %s2769_s27, 0 }
  0x7d   : > { %v510_v9 = vld [vmem:[%s2117_s23 + $0x5a8] sm:$0xff]  ;;  %v509_v11 = vld [vmem:[%s2117_s23 + $0x5a0] sm:$0xff]  ;;  %938 = vmatpush1.msra.mxu1 %v513_v7  ;;  %862 = vmatprep.subr.mxu0 %v382_v8  ;;  %p1825_p0 = scmp.ne.s32.totalorder %s2702_s30, %s1824_s19  ;;  %s1906_s22 = smov [#allocation9]  }
  0x7e   : > { %v378_v12 = vld [vmem:[%s2117_s23 + $0x188] sm:$0xff]  ;;  %939 = vmatprep.subr.mxu1 %v510_v9  ;;  %v377_v14 = vld [vmem:[%s2117_s23 + $0x180] sm:$0xff]  ;;  %863 = vmatpush1.msra.mxu0 %v381_v10  ;;  %s1828_s20 = sshll.u32 %s1906_s22, 4  ;;  %s1829_s20 = int_to_ptr.vmem [resolvable:$false] %s1828_s20 }
  0x7f   : > { %v506_v13 = vld [vmem:[%s2117_s23 + $0x588] sm:$0xff]  ;;  %v505_v15 = vld [vmem:[%s2117_s23 + $0x580] sm:$0xff]  ;;  %940 = vmatpush1.msra.mxu1 %v509_v11  ;;  %864 = vmatprep.subr.mxu0 %v378_v12  ;;  %p1826_p3 = pnand %p1825_p0, %p2785_p7  ;;  %s1830_s25 = scalar_lea.vmem %s1829_s20, 2048 }
  0x80   : > { %v374_v16 = vld [vmem:[%s2117_s23 + $0x168] sm:$0xff]  ;;  %941 = vmatprep.subr.mxu1 %v506_v13  ;;  %v373_v18 = vld [vmem:[%s2117_s23 + $0x160] sm:$0xff]  ;;  %865 = vmatpush1.msra.mxu0 %v377_v14  ;;  %p1831_p10 = scmp.lt.s32.totalorder %s2702_s30, %s1829_s20  ;;  %p1832_p1 = scmp.lt.s32.totalorder %s1830_s25, %s1824_s19 }
  0x81   : > { %v502_v17 = vld [vmem:[%s2117_s23 + $0x568] sm:$0xff]  ;;  %v501_v19 = vld [vmem:[%s2117_s23 + $0x560] sm:$0xff]  ;;  %942 = vmatpush1.msra.mxu1 %v505_v15  ;;  %866 = vmatprep.subr.mxu0 %v374_v16  ;;  %p1827_p9 = pneg %p1826_p3 }
  0x82   : > { %v370_v20 = vld [vmem:[%s2117_s23 + $0x148] sm:$0xff]  ;;  %943 = vmatprep.subr.mxu1 %v502_v17  ;;  %v369_v22 = vld [vmem:[%s2117_s23 + $0x140] sm:$0xff]  ;;  %867 = vmatpush1.msra.mxu0 %v373_v18  ;;  %p1833_p5 = por %p1832_p1, %p1831_p10 }
  0x83   : > { %v498_v21 = vld [vmem:[%s2117_s23 + $0x548] sm:$0xff]  ;;  %v497_v23 = vld [vmem:[%s2117_s23 + $0x540] sm:$0xff]  ;;  %944 = vmatpush1.msra.mxu1 %v501_v19  ;;  %868 = vmatprep.subr.mxu0 %v370_v20 }
  0x84   : > { %v366_v24 = vld [vmem:[%s2117_s23 + $0x128] sm:$0xff]  ;;  %945 = vmatprep.subr.mxu1 %v498_v21  ;;  %v365_v26 = vld [vmem:[%s2117_s23 + $0x120] sm:$0xff]  ;;  %869 = vmatpush1.msra.mxu0 %v369_v22  ;;  %p1834_p12 = pnand %p1833_p5, %p1827_p9 }
  0x85   : > { %v494_v25 = vld [vmem:[%s2117_s23 + $0x528] sm:$0xff]  ;;  %v493_v27 = vld [vmem:[%s2117_s23 + $0x520] sm:$0xff]  ;;  %946 = vmatpush1.msra.mxu1 %v497_v23  ;;  %870 = vmatprep.subr.mxu0 %v366_v24 }
  0x86   : > { %v362_v28 = vld [vmem:[%s2117_s23 + $0x108] sm:$0xff]  ;;  %947 = vmatprep.subr.mxu1 %v494_v25  ;;  %v361_v30 = vld [vmem:[%s2117_s23 + $0x100] sm:$0xff]  ;;  %871 = vmatpush1.msra.mxu0 %v365_v26 }
  0x87   : > { %v490_v29 = vld [vmem:[%s2117_s23 + $0x508] sm:$0xff]  ;;  %v489_v31 = vld [vmem:[%s2117_s23 + $0x500] sm:$0xff]  ;;  %948 = vmatpush1.msra.mxu1 %v493_v27  ;;  %872 = vmatprep.subr.mxu0 %v362_v28 }
  0x88   : > { %v358_v32 = vld [vmem:[%s2117_s23 + $0xe8] sm:$0xff]  ;;  %949 = vmatprep.subr.mxu1 %v490_v29  ;;  %v357_v34 = vld [vmem:[%s2117_s23 + $0xe0] sm:$0xff]  ;;  %873 = vmatpush1.msra.mxu0 %v361_v30 }
  0x89   : > { %v486_v33 = vld [vmem:[%s2117_s23 + $0x4e8] sm:$0xff]  ;;  %v485_v35 = vld [vmem:[%s2117_s23 + $0x4e0] sm:$0xff]  ;;  %950 = vmatpush1.msra.mxu1 %v489_v31  ;;  %874 = vmatprep.subr.mxu0 %v358_v32 }
  0x8a   : > { %v354_v36 = vld [vmem:[%s2117_s23 + $0xc8] sm:$0xff]  ;;  %951 = vmatprep.subr.mxu1 %v486_v33  ;;  %v353_v38 = vld [vmem:[%s2117_s23 + $0xc0] sm:$0xff]  ;;  %875 = vmatpush1.msra.mxu0 %v357_v34 }
  0x8b   : > { %v482_v37 = vld [vmem:[%s2117_s23 + $0x4c8] sm:$0xff]  ;;  %v481_v39 = vld [vmem:[%s2117_s23 + $0x4c0] sm:$0xff]  ;;  %952 = vmatpush1.msra.mxu1 %v485_v35  ;;  %876 = vmatprep.subr.mxu0 %v354_v36 }
  0x8c   : > { %v350_v40 = vld [vmem:[%s2117_s23 + $0xa8] sm:$0xff]  ;;  %953 = vmatprep.subr.mxu1 %v482_v37  ;;  %v349_v42 = vld [vmem:[%s2117_s23 + $0xa0] sm:$0xff]  ;;  %877 = vmatpush1.msra.mxu0 %v353_v38 }
  0x8d   : > { %v478_v41 = vld [vmem:[%s2117_s23 + $0x4a8] sm:$0xff]  ;;  %v477_v43 = vld [vmem:[%s2117_s23 + $0x4a0] sm:$0xff]  ;;  %954 = vmatpush1.msra.mxu1 %v481_v39  ;;  %878 = vmatprep.subr.mxu0 %v350_v40 }
  0x8e   : > { %v346_v44 = vld [vmem:[%s2117_s23 + $0x88] sm:$0xff]  ;;  %955 = vmatprep.subr.mxu1 %v478_v41  ;;  %v345_v46 = vld [vmem:[%s2117_s23 + $0x80] sm:$0xff]  ;;  %879 = vmatpush1.msra.mxu0 %v349_v42 }
  0x8f   : > { %v474_v45 = vld [vmem:[%s2117_s23 + $0x488] sm:$0xff]  ;;  %v473_v47 = vld [vmem:[%s2117_s23 + $0x480] sm:$0xff]  ;;  %956 = vmatpush1.msra.mxu1 %v477_v43  ;;  %880 = vmatprep.subr.mxu0 %v346_v44 }
  0x90   : > { %v342_v48 = vld [vmem:[%s2117_s23 + $0x68] sm:$0xff]  ;;  %957 = vmatprep.subr.mxu1 %v474_v45  ;;  %v341_v50 = vld [vmem:[%s2117_s23 + $0x60] sm:$0xff]  ;;  %881 = vmatpush1.msra.mxu0 %v345_v46 }
  0x91   : > { %v470_v49 = vld [vmem:[%s2117_s23 + $0x468] sm:$0xff]  ;;  %v469_v51 = vld [vmem:[%s2117_s23 + $0x460] sm:$0xff]  ;;  %958 = vmatpush1.msra.mxu1 %v473_v47  ;;  %882 = vmatprep.subr.mxu0 %v342_v48 }
  0x92   : > { %v338_v52 = vld [vmem:[%s2117_s23 + $0x48] sm:$0xff]  ;;  %959 = vmatprep.subr.mxu1 %v470_v49  ;;  %v337_v54 = vld [vmem:[%s2117_s23 + $0x40] sm:$0xff]  ;;  %883 = vmatpush1.msra.mxu0 %v341_v50 }
  0x93   : > { %v466_v53 = vld [vmem:[%s2117_s23 + $0x448] sm:$0xff]  ;;  %v465_v55 = vld [vmem:[%s2117_s23 + $0x440] sm:$0xff]  ;;  %960 = vmatpush1.msra.mxu1 %v469_v51  ;;  %884 = vmatprep.subr.mxu0 %v338_v52 }
  0x94   : > { %v334_v56 = vld [vmem:[%s2117_s23 + $0x28] sm:$0xff]  ;;  %961 = vmatprep.subr.mxu1 %v466_v53  ;;  %v333_v58 = vld [vmem:[%s2117_s23 + $0x20] sm:$0xff]  ;;  %885 = vmatpush1.msra.mxu0 %v337_v54 }
  0x95   : > { %v462_v57 = vld [vmem:[%s2117_s23 + $0x428] sm:$0xff]  ;;  %v461_v59 = vld [vmem:[%s2117_s23 + $0x420] sm:$0xff]  ;;  %962 = vmatpush1.msra.mxu1 %v465_v55  ;;  %886 = vmatprep.subr.mxu0 %v334_v56 }
  0x96   : > { %v330_v60 = vld [vmem:[%s2117_s23 + $0x8] sm:$0xff]  ;;  %963 = vmatprep.subr.mxu1 %v462_v57  ;;  %v329_v62 = vld [vmem:[%s2117_s23] sm:$0xff]  ;;  %887 = vmatpush1.msra.mxu0 %v333_v58 }
  0x97   : > { %v458_v61 = vld [vmem:[%s2117_s23 + $0x408] sm:$0xff]  ;;  %v457_v63 = vld [vmem:[%s2117_s23 + $0x400] sm:$0xff]  ;;  %964 = vmatpush1.msra.mxu1 %v461_v59  ;;  %888 = vmatprep.subr.mxu0 %v330_v60 }
  0x98   : > { %v454_v0 = vld [vmem:[%s2117_s23 + $0x3e8] sm:$0xff]  ;;  %965 = vmatprep.subr.mxu1 %v458_v61  ;;  %v453_v2 = vld [vmem:[%s2117_s23 + $0x3e0] sm:$0xff]  ;;  %889 = vmatpush1.msra.mxu0 %v329_v62  ;;  %v284_v62 = vld [vmem:[#allocation2 + $0x18] sm:$0xff] }
  0x99   : > { %v582_v1 = vld [vmem:[%s2117_s23 + $0x7e8] sm:$0xff]  ;;  %v581_v3 = vld [vmem:[%s2117_s23 + $0x7e0] sm:$0xff]  ;;  %966 = vmatpush1.msra.mxu1 %v457_v63  ;;  %890 = vmatprep.subr.mxu0 %v454_v0  ;;  %v300_v63 = vld [vmem:[#allocation5 + $0x18] sm:$0xff] }
  0x9a   : > { %v450_v4 = vld [vmem:[%s2117_s23 + $0x3c8] sm:$0xff]  ;;  %967 = vmatprep.subr.mxu1 %v582_v1  ;;  %v449_v6 = vld [vmem:[%s2117_s23 + $0x3c0] sm:$0xff]  ;;  %891 = vmatpush2.msra.mxu0 %v453_v2  ;;  %v283_v2 = vld [vmem:[#allocation2 + $0x10] sm:$0xff] }
  0x9b   : > { %v578_v5 = vld [vmem:[%s2117_s23 + $0x7c8] sm:$0xff]  ;;  %v577_v7 = vld [vmem:[%s2117_s23 + $0x7c0] sm:$0xff]  ;;  %968 = vmatpush2.msra.mxu1 %v581_v3  ;;  %892 = vmatprep.subr.mxu0 %v450_v4  ;;  %v299_v3 = vld [vmem:[#allocation5 + $0x10] sm:$0xff] }
  0x9c   : > { %v446_v8 = vld [vmem:[%s2117_s23 + $0x3a8] sm:$0xff]  ;;  %969 = vmatprep.subr.mxu1 %v578_v5  ;;  %v445_v10 = vld [vmem:[%s2117_s23 + $0x3a0] sm:$0xff]  ;;  %893 = vmatpush2.msra.mxu0 %v449_v6 }
  0x9d   : > { %v574_v9 = vld [vmem:[%s2117_s23 + $0x7a8] sm:$0xff]  ;;  %v573_v11 = vld [vmem:[%s2117_s23 + $0x7a0] sm:$0xff]  ;;  %970 = vmatpush2.msra.mxu1 %v577_v7  ;;  %894 = vmatprep.subr.mxu0 %v446_v8  ;;  %v2252_v8 = vadd.f32 %v300_v63, %v284_v62 }
  0x9e   : > { %v442_v12 = vld [vmem:[%s2117_s23 + $0x388] sm:$0xff]  ;;  %971 = vmatprep.subr.mxu1 %v574_v9  ;;  %v441_v14 = vld [vmem:[%s2117_s23 + $0x380] sm:$0xff]  ;;  %895 = vmatpush2.msra.mxu0 %v445_v10 }
  0x9f   : > { %v570_v13 = vld [vmem:[%s2117_s23 + $0x788] sm:$0xff]  ;;  %v569_v15 = vld [vmem:[%s2117_s23 + $0x780] sm:$0xff]  ;;  %972 = vmatpush2.msra.mxu1 %v573_v11  ;;  %896 = vmatprep.subr.mxu0 %v442_v12  ;;  %v2257_v11 = vadd.f32 %v299_v3, %v283_v2 }
  0xa0   : > { %v438_v16 = vld [vmem:[%s2117_s23 + $0x368] sm:$0xff]  ;;  %973 = vmatprep.subr.mxu1 %v570_v13  ;;  %v437_v18 = vld [vmem:[%s2117_s23 + $0x360] sm:$0xff]  ;;  %897 = vmatpush2.msra.mxu0 %v441_v14 }
  0xa1   : > { %v566_v17 = vld [vmem:[%s2117_s23 + $0x768] sm:$0xff]  ;;  %v565_v19 = vld [vmem:[%s2117_s23 + $0x760] sm:$0xff]  ;;  %974 = vmatpush2.msra.mxu1 %v569_v15  ;;  %898 = vmatprep.subr.mxu0 %v438_v16 }
  0xa2   : > { %v434_v20 = vld [vmem:[%s2117_s23 + $0x348] sm:$0xff]  ;;  %975 = vmatprep.subr.mxu1 %v566_v17  ;;  %v433_v22 = vld [vmem:[%s2117_s23 + $0x340] sm:$0xff]  ;;  %899 = vmatpush2.msra.mxu0 %v437_v18 }
  0xa3   : > { %v562_v21 = vld [vmem:[%s2117_s23 + $0x748] sm:$0xff]  ;;  %v561_v23 = vld [vmem:[%s2117_s23 + $0x740] sm:$0xff]  ;;  %976 = vmatpush2.msra.mxu1 %v565_v19  ;;  %900 = vmatprep.subr.mxu0 %v434_v20 }
  0xa4   : > { %v430_v24 = vld [vmem:[%s2117_s23 + $0x328] sm:$0xff]  ;;  %977 = vmatprep.subr.mxu1 %v562_v21  ;;  %v429_v26 = vld [vmem:[%s2117_s23 + $0x320] sm:$0xff]  ;;  %901 = vmatpush2.msra.mxu0 %v433_v22 }
  0xa5   : > { %v558_v25 = vld [vmem:[%s2117_s23 + $0x728] sm:$0xff]  ;;  %v557_v27 = vld [vmem:[%s2117_s23 + $0x720] sm:$0xff]  ;;  %978 = vmatpush2.msra.mxu1 %v561_v23  ;;  %902 = vmatprep.subr.mxu0 %v430_v24 }
  0xa6   : > { %v426_v28 = vld [vmem:[%s2117_s23 + $0x308] sm:$0xff]  ;;  %979 = vmatprep.subr.mxu1 %v558_v25  ;;  %v425_v30 = vld [vmem:[%s2117_s23 + $0x300] sm:$0xff]  ;;  %903 = vmatpush2.msra.mxu0 %v429_v26 }
  0xa7   : > { %v554_v29 = vld [vmem:[%s2117_s23 + $0x708] sm:$0xff]  ;;  %v553_v31 = vld [vmem:[%s2117_s23 + $0x700] sm:$0xff]  ;;  %980 = vmatpush2.msra.mxu1 %v557_v27  ;;  %904 = vmatprep.subr.mxu0 %v426_v28 }
  0xa8   : > { %v422_v32 = vld [vmem:[%s2117_s23 + $0x2e8] sm:$0xff]  ;;  %981 = vmatprep.subr.mxu1 %v554_v29  ;;  %v421_v34 = vld [vmem:[%s2117_s23 + $0x2e0] sm:$0xff]  ;;  %905 = vmatpush2.msra.mxu0 %v425_v30 }
  0xa9   : > { %v550_v33 = vld [vmem:[%s2117_s23 + $0x6e8] sm:$0xff]  ;;  %v549_v35 = vld [vmem:[%s2117_s23 + $0x6e0] sm:$0xff]  ;;  %982 = vmatpush2.msra.mxu1 %v553_v31  ;;  %906 = vmatprep.subr.mxu0 %v422_v32 }
  0xaa   : > { %v418_v36 = vld [vmem:[%s2117_s23 + $0x2c8] sm:$0xff]  ;;  %983 = vmatprep.subr.mxu1 %v550_v33  ;;  %v417_v38 = vld [vmem:[%s2117_s23 + $0x2c0] sm:$0xff]  ;;  %907 = vmatpush2.msra.mxu0 %v421_v34 }
  0xab   : > { %v546_v37 = vld [vmem:[%s2117_s23 + $0x6c8] sm:$0xff]  ;;  %v545_v39 = vld [vmem:[%s2117_s23 + $0x6c0] sm:$0xff]  ;;  %984 = vmatpush2.msra.mxu1 %v549_v35  ;;  %908 = vmatprep.subr.mxu0 %v418_v36 }
  0xac   : > { %v414_v40 = vld [vmem:[%s2117_s23 + $0x2a8] sm:$0xff]  ;;  %985 = vmatprep.subr.mxu1 %v546_v37  ;;  %v413_v42 = vld [vmem:[%s2117_s23 + $0x2a0] sm:$0xff]  ;;  %909 = vmatpush2.msra.mxu0 %v417_v38 }
  0xad   : > { %v542_v41 = vld [vmem:[%s2117_s23 + $0x6a8] sm:$0xff]  ;;  %v541_v43 = vld [vmem:[%s2117_s23 + $0x6a0] sm:$0xff]  ;;  %986 = vmatpush2.msra.mxu1 %v545_v39  ;;  %910 = vmatprep.subr.mxu0 %v414_v40 }
  0xae   : > { %v410_v44 = vld [vmem:[%s2117_s23 + $0x288] sm:$0xff]  ;;  %987 = vmatprep.subr.mxu1 %v542_v41  ;;  %v409_v46 = vld [vmem:[%s2117_s23 + $0x280] sm:$0xff]  ;;  %911 = vmatpush2.msra.mxu0 %v413_v42 }
  0xaf   : > { %v538_v45 = vld [vmem:[%s2117_s23 + $0x688] sm:$0xff]  ;;  %v537_v47 = vld [vmem:[%s2117_s23 + $0x680] sm:$0xff]  ;;  %988 = vmatpush2.msra.mxu1 %v541_v43  ;;  %912 = vmatprep.subr.mxu0 %v410_v44 }
  0xb0   : > { %v406_v48 = vld [vmem:[%s2117_s23 + $0x268] sm:$0xff]  ;;  %v405_v50 = vld [vmem:[%s2117_s23 + $0x260] sm:$0xff]  ;;  %989 = vmatprep.subr.mxu1 %v538_v45  ;;  %913 = vmatpush2.msra.mxu0 %v409_v46 }
  0xb1   : > { %v534_v49 = vld [vmem:[%s2117_s23 + $0x668] sm:$0xff]  ;;  %v533_v51 = vld [vmem:[%s2117_s23 + $0x660] sm:$0xff]  ;;  %990 = vmatpush2.msra.mxu1 %v537_v47  ;;  %914 = vmatprep.subr.mxu0 %v406_v48 }
  0xb2   : > { %v402_v52 = vld [vmem:[%s2117_s23 + $0x248] sm:$0xff]  ;;  %v401_v54 = vld [vmem:[%s2117_s23 + $0x240] sm:$0xff]  ;;  %991 = vmatprep.subr.mxu1 %v534_v49  ;;  %915 = vmatpush2.msra.mxu0 %v405_v50 }
  0xb3   : > { %v530_v53 = vld [vmem:[%s2117_s23 + $0x648] sm:$0xff]  ;;  %v529_v55 = vld [vmem:[%s2117_s23 + $0x640] sm:$0xff]  ;;  %992 = vmatpush2.msra.mxu1 %v533_v51  ;;  %916 = vmatprep.subr.mxu0 %v402_v52 }
  0xb4   : > { %v398_v56 = vld [vmem:[%s2117_s23 + $0x228] sm:$0xff]  ;;  %v397_v58 = vld [vmem:[%s2117_s23 + $0x220] sm:$0xff]  ;;  %993 = vmatprep.subr.mxu1 %v530_v53  ;;  %917 = vmatpush2.msra.mxu0 %v401_v54 }
  0xb5   : > { %v526_v57 = vld [vmem:[%s2117_s23 + $0x628] sm:$0xff]  ;;  %v525_v59 = vld [vmem:[%s2117_s23 + $0x620] sm:$0xff]  ;;  %994 = vmatpush2.msra.mxu1 %v529_v55  ;;  %918 = vmatprep.subr.mxu0 %v398_v56 }
  0xb6   : > { %v282_v60 = vld [vmem:[#allocation2 + $0x8] sm:$0xff]  ;;  %v281_v0 = vld [vmem:[#allocation2] sm:$0xff]  ;;  %995 = vmatprep.subr.mxu1 %v526_v57  ;;  %919 = vmatpush2.msra.mxu0 %v397_v58 }
  0xb7   : > { %v298_v61 = vld [vmem:[#allocation5 + $0x8] sm:$0xff]  ;;  %v297_v1 = vld [vmem:[#allocation5] sm:$0xff]  ;;  %996 = vmatpush2.msra.mxu1 %v525_v59  ;;  %999 = vmatprep.mubr.f32.mxu1 %v2252_v8 }
  0xb8   : > { %v394_v4 = vld [vmem:[%s2117_s23 + $0x208] sm:$0xff]  ;;  %v2249_v6 = vadd.f32 %v298_v61, %v282_v60  ;;  %v393_v7 = vld [vmem:[%s2117_s23 + $0x200] sm:$0xff]  ;;  %v2255_v10 = vadd.f32 %v297_v1, %v281_v0 }
  0xb9   : > { %v522_v5 = vld [vmem:[%s2117_s23 + $0x608] sm:$0xff]  ;;  %v521_v9 = vld [vmem:[%s2117_s23 + $0x600] sm:$0xff]  ;;  %920 = vmatprep.subr.mxu0 %v394_v4 }
  0xba   : > { %997 = vmatprep.subr.mxu1 %v522_v5  ;;  %921 = vmatpush2.msra.mxu0 %v393_v7  ;;  %v646_v12 = vld [vmem:[%s2117_s23 + $0x9e8] sm:$0xff]  ;;  %v645_v14 = vld [vmem:[%s2117_s23 + $0x9e0] sm:$0xff] }
  0xbb   : > { %922 = vmatprep.mubr.f32.mxu0 %v2249_v6  ;;  %v774_v13 = vld [vmem:[%s2117_s23 + $0xde8] sm:$0xff]  ;;  %998 = vmatpush2.msra.mxu1 %v521_v9  ;;  %v773_v15 = vld [vmem:[%s2117_s23 + $0xde0] sm:$0xff] }
  0xbc   : > { %923 = vmatmul.mubr.f32.vlgmr.msra.gmra.mxu0 %v2255_v10  ;;  %1000 = vmatmul.mubr.f32.vlgmr.msra.gmra.mxu1 %v2257_v11  ;;  %v642_v16 = vld [vmem:[%s2117_s23 + $0x9c8] sm:$0xff]  ;;  %v641_v18 = vld [vmem:[%s2117_s23 + $0x9c0] sm:$0xff] }
  0xbd   : > { %v770_v17 = vld [vmem:[%s2117_s23 + $0xdc8] sm:$0xff]  ;;  %1012 = vmatprep.subr.mxu0 %v646_v12  ;;  %1089 = vmatprep.subr.mxu1 %v774_v13  ;;  %v769_v19 = vld [vmem:[%s2117_s23 + $0xdc0] sm:$0xff] }
  0xbe   : > { %1013 = vmatpush1.msra.mxu0 %v645_v14  ;;  %1090 = vmatpush1.msra.mxu1 %v773_v15  ;;  %v638_v20 = vld [vmem:[%s2117_s23 + $0x9a8] sm:$0xff]  ;;  %v637_v22 = vld [vmem:[%s2117_s23 + $0x9a0] sm:$0xff] }
  0xbf   : > { %v766_v21 = vld [vmem:[%s2117_s23 + $0xda8] sm:$0xff]  ;;  %1014 = vmatprep.subr.mxu0 %v642_v16  ;;  %1091 = vmatprep.subr.mxu1 %v770_v17  ;;  %v765_v23 = vld [vmem:[%s2117_s23 + $0xda0] sm:$0xff] }
  0xc0   : > { %1015 = vmatpush1.msra.mxu0 %v641_v18  ;;  %1092 = vmatpush1.msra.mxu1 %v769_v19  ;;  %v634_v24 = vld [vmem:[%s2117_s23 + $0x988] sm:$0xff]  ;;  %v633_v26 = vld [vmem:[%s2117_s23 + $0x980] sm:$0xff] }
  0xc1   : > { %v762_v25 = vld [vmem:[%s2117_s23 + $0xd88] sm:$0xff]  ;;  %1016 = vmatprep.subr.mxu0 %v638_v20  ;;  %1093 = vmatprep.subr.mxu1 %v766_v21  ;;  %v761_v27 = vld [vmem:[%s2117_s23 + $0xd80] sm:$0xff] }
  0xc2   : > { %1017 = vmatpush1.msra.mxu0 %v637_v22  ;;  %1094 = vmatpush1.msra.mxu1 %v765_v23  ;;  %v630_v28 = vld [vmem:[%s2117_s23 + $0x968] sm:$0xff]  ;;  %v629_v30 = vld [vmem:[%s2117_s23 + $0x960] sm:$0xff] }
  0xc3   : > { %v758_v29 = vld [vmem:[%s2117_s23 + $0xd68] sm:$0xff]  ;;  %1018 = vmatprep.subr.mxu0 %v634_v24  ;;  %1095 = vmatprep.subr.mxu1 %v762_v25  ;;  %v757_v31 = vld [vmem:[%s2117_s23 + $0xd60] sm:$0xff] }
  0xc4   : > { %1019 = vmatpush1.msra.mxu0 %v633_v26  ;;  %1096 = vmatpush1.msra.mxu1 %v761_v27  ;;  %v626_v32 = vld [vmem:[%s2117_s23 + $0x948] sm:$0xff]  ;;  %v625_v34 = vld [vmem:[%s2117_s23 + $0x940] sm:$0xff] }
  0xc5   : > { %v754_v33 = vld [vmem:[%s2117_s23 + $0xd48] sm:$0xff]  ;;  %1020 = vmatprep.subr.mxu0 %v630_v28  ;;  %1097 = vmatprep.subr.mxu1 %v758_v29  ;;  %v753_v35 = vld [vmem:[%s2117_s23 + $0xd40] sm:$0xff] }
  0xc6   : > { %1021 = vmatpush1.msra.mxu0 %v629_v30  ;;  %1098 = vmatpush1.msra.mxu1 %v757_v31  ;;  %v622_v36 = vld [vmem:[%s2117_s23 + $0x928] sm:$0xff]  ;;  %v621_v38 = vld [vmem:[%s2117_s23 + $0x920] sm:$0xff] }
  0xc7   : > { %v750_v37 = vld [vmem:[%s2117_s23 + $0xd28] sm:$0xff]  ;;  %1022 = vmatprep.subr.mxu0 %v626_v32  ;;  %1099 = vmatprep.subr.mxu1 %v754_v33  ;;  %v749_v39 = vld [vmem:[%s2117_s23 + $0xd20] sm:$0xff] }
  0xc8   : > { %1023 = vmatpush1.msra.mxu0 %v625_v34  ;;  %1100 = vmatpush1.msra.mxu1 %v753_v35  ;;  %v618_v40 = vld [vmem:[%s2117_s23 + $0x908] sm:$0xff]  ;;  %v617_v42 = vld [vmem:[%s2117_s23 + $0x900] sm:$0xff] }
  0xc9   : > { %v746_v41 = vld [vmem:[%s2117_s23 + $0xd08] sm:$0xff]  ;;  %1024 = vmatprep.subr.mxu0 %v622_v36  ;;  %1101 = vmatprep.subr.mxu1 %v750_v37  ;;  %v745_v43 = vld [vmem:[%s2117_s23 + $0xd00] sm:$0xff] }
  0xca   : > { %1025 = vmatpush1.msra.mxu0 %v621_v38  ;;  %1102 = vmatpush1.msra.mxu1 %v749_v39  ;;  %v614_v44 = vld [vmem:[%s2117_s23 + $0x8e8] sm:$0xff]  ;;  %v613_v46 = vld [vmem:[%s2117_s23 + $0x8e0] sm:$0xff] }
  0xcb   : > { %v742_v45 = vld [vmem:[%s2117_s23 + $0xce8] sm:$0xff]  ;;  %1026 = vmatprep.subr.mxu0 %v618_v40  ;;  %1103 = vmatprep.subr.mxu1 %v746_v41  ;;  %v741_v47 = vld [vmem:[%s2117_s23 + $0xce0] sm:$0xff] }
  0xcc   : > { %1027 = vmatpush1.msra.mxu0 %v617_v42  ;;  %1104 = vmatpush1.msra.mxu1 %v745_v43  ;;  %v610_v48 = vld [vmem:[%s2117_s23 + $0x8c8] sm:$0xff]  ;;  %v609_v50 = vld [vmem:[%s2117_s23 + $0x8c0] sm:$0xff] }
  0xcd   : > { %v738_v49 = vld [vmem:[%s2117_s23 + $0xcc8] sm:$0xff]  ;;  %1028 = vmatprep.subr.mxu0 %v614_v44  ;;  %1105 = vmatprep.subr.mxu1 %v742_v45  ;;  %v737_v51 = vld [vmem:[%s2117_s23 + $0xcc0] sm:$0xff] }
  0xce   : > { %1029 = vmatpush1.msra.mxu0 %v613_v46  ;;  %1106 = vmatpush1.msra.mxu1 %v741_v47  ;;  %v606_v52 = vld [vmem:[%s2117_s23 + $0x8a8] sm:$0xff]  ;;  %v605_v54 = vld [vmem:[%s2117_s23 + $0x8a0] sm:$0xff] }
  0xcf   : > { %v734_v53 = vld [vmem:[%s2117_s23 + $0xca8] sm:$0xff]  ;;  %1030 = vmatprep.subr.mxu0 %v610_v48  ;;  %1107 = vmatprep.subr.mxu1 %v738_v49  ;;  %v733_v55 = vld [vmem:[%s2117_s23 + $0xca0] sm:$0xff] }
  0xd0   : > { %1031 = vmatpush1.msra.mxu0 %v609_v50  ;;  %1108 = vmatpush1.msra.mxu1 %v737_v51  ;;  %v602_v56 = vld [vmem:[%s2117_s23 + $0x888] sm:$0xff]  ;;  %v601_v58 = vld [vmem:[%s2117_s23 + $0x880] sm:$0xff] }
  0xd1   : > { %v730_v57 = vld [vmem:[%s2117_s23 + $0xc88] sm:$0xff]  ;;  %1032 = vmatprep.subr.mxu0 %v606_v52  ;;  %1109 = vmatprep.subr.mxu1 %v734_v53  ;;  %v729_v59 = vld [vmem:[%s2117_s23 + $0xc80] sm:$0xff] }
  0xd2   : > { %1033 = vmatpush1.msra.mxu0 %v605_v54  ;;  %1110 = vmatpush1.msra.mxu1 %v733_v55  ;;  %v598_v60 = vld [vmem:[%s2117_s23 + $0x868] sm:$0xff]  ;;  %v597_v62 = vld [vmem:[%s2117_s23 + $0x860] sm:$0xff] }
  0xd3   : > { %v726_v61 = vld [vmem:[%s2117_s23 + $0xc68] sm:$0xff]  ;;  %1034 = vmatprep.subr.mxu0 %v602_v56  ;;  %1111 = vmatprep.subr.mxu1 %v730_v57  ;;  %v725_v63 = vld [vmem:[%s2117_s23 + $0xc60] sm:$0xff]  ;;  %v292_v57 = vld [vmem:[#allocation2 + $0x58] sm:$0x3] }
  0xd4   : > { %1035 = vmatpush1.msra.mxu0 %v601_v58  ;;  %1112 = vmatpush1.msra.mxu1 %v729_v59  ;;  %v594_v0 = vld [vmem:[%s2117_s23 + $0x848] sm:$0xff]  ;;  %v593_v2 = vld [vmem:[%s2117_s23 + $0x840] sm:$0xff]  ;;  %v308_v58 = vld [vmem:[#allocation5 + $0x58] sm:$0x3] }
  0xd5   : > { %v722_v1 = vld [vmem:[%s2117_s23 + $0xc48] sm:$0xff]  ;;  %1036 = vmatprep.subr.mxu0 %v598_v60  ;;  %1113 = vmatprep.subr.mxu1 %v726_v61  ;;  %v721_v3 = vld [vmem:[%s2117_s23 + $0xc40] sm:$0xff]  ;;  %v291_v61 = vld [vmem:[#allocation2 + $0x50] sm:$0x3] }
  0xd6   : > { %1037 = vmatpush1.msra.mxu0 %v597_v62  ;;  %1114 = vmatpush1.msra.mxu1 %v725_v63  ;;  %v590_v4 = vld [vmem:[%s2117_s23 + $0x828] sm:$0xff]  ;;  %v589_v7 = vld [vmem:[%s2117_s23 + $0x820] sm:$0xff]  ;;  %v307_v62 = vld [vmem:[#allocation5 + $0x50] sm:$0x3] }
  0xd7   : > { %v718_v5 = vld [vmem:[%s2117_s23 + $0xc28] sm:$0xff]  ;;  %1038 = vmatprep.subr.mxu0 %v594_v0  ;;  %1115 = vmatprep.subr.mxu1 %v722_v1  ;;  %v717_v9 = vld [vmem:[%s2117_s23 + $0xc20] sm:$0xff] }
  0xd8   : > { %1039 = vmatpush1.msra.mxu0 %v593_v2  ;;  %1116 = vmatpush1.msra.mxu1 %v721_v3  ;;  %v586_v12 = vld [vmem:[%s2117_s23 + $0x808] sm:$0xff]  ;;  %v585_v14 = vld [vmem:[%s2117_s23 + $0x800] sm:$0xff]  ;;  %v2371_v2 = vadd.f32 %v308_v58, %v292_v57  ;;  %v312_v57 = vld [vmem:[#allocation5 + $0x78] sm:$0x3] }
  0xd9   : > { %v714_v13 = vld [vmem:[%s2117_s23 + $0xc08] sm:$0xff]  ;;  %1040 = vmatprep.subr.mxu0 %v590_v4  ;;  %1117 = vmatprep.subr.mxu1 %v718_v5  ;;  %v713_v15 = vld [vmem:[%s2117_s23 + $0xc00] sm:$0xff]  ;;  %v2375_v4 = vadd.f32 %v307_v62, %v291_v61  ;;  %v375_v58 = vld [vmem:[%s2117_s23 + $0x170] sm:$0xff] }
  0xda   : > { %1041 = vmatpush1.msra.mxu0 %v589_v7  ;;  %1118 = vmatpush1.msra.mxu1 %v717_v9  ;;  %v710_v16 = vld [vmem:[%s2117_s23 + $0xbe8] sm:$0xff]  ;;  %v709_v18 = vld [vmem:[%s2117_s23 + $0xbe0] sm:$0xff]  ;;  %v311_v61 = vld [vmem:[#allocation5 + $0x70] sm:$0x3] }
  0xdb   : > { %v826_v17 = vld [vmem:[%s2117_s23 + $0xf88] sm:$0xff]  ;;  %1042 = vmatprep.subr.mxu0 %v586_v12  ;;  %1119 = vmatprep.subr.mxu1 %v714_v13  ;;  %v825_v19 = vld [vmem:[%s2117_s23 + $0xf80] sm:$0xff]  ;;  %v515_v62 = vld [vmem:[%s2117_s23 + $0x5d0] sm:$0xff] }
  0xdc   : > { %1043 = vmatpush1.msra.mxu0 %v585_v14  ;;  %1120 = vmatpush1.msra.mxu1 %v713_v15  ;;  %v706_v20 = vld [vmem:[%s2117_s23 + $0xbc8] sm:$0xff]  ;;  %v705_v22 = vld [vmem:[%s2117_s23 + $0xbc0] sm:$0xff]  ;;  %v288_v15 = vld [vmem:[#allocation2 + $0x38] sm:$0xff] }
  0xdd   : > { %v822_v21 = vld [vmem:[%s2117_s23 + $0xf68] sm:$0xff]  ;;  %1044 = vmatprep.subr.mxu0 %v710_v16  ;;  %1127 = vmatprep.subr.mxu1 %v826_v17  ;;  %v821_v23 = vld [vmem:[%s2117_s23 + $0xf60] sm:$0xff]  ;;  %v304_v16 = vld [vmem:[#allocation5 + $0x38] sm:$0xff] }
  0xde   : > { %1045 = vmatpush2.msra.mxu0 %v709_v18  ;;  %1128 = vmatpush2.msra.mxu1 %v825_v19  ;;  %v702_v24 = vld [vmem:[%s2117_s23 + $0xba8] sm:$0xff]  ;;  %v701_v26 = vld [vmem:[%s2117_s23 + $0xba0] sm:$0xff]  ;;  %v287_v18 = vld [vmem:[#allocation2 + $0x30] sm:$0xff] }
  0xdf   : > { %v818_v25 = vld [vmem:[%s2117_s23 + $0xf48] sm:$0xff]  ;;  %1046 = vmatprep.subr.mxu0 %v706_v20  ;;  %1129 = vmatprep.subr.mxu1 %v822_v21  ;;  %v817_v27 = vld [vmem:[%s2117_s23 + $0xf40] sm:$0xff]  ;;  %v303_v19 = vld [vmem:[#allocation5 + $0x30] sm:$0xff] }
  0xe0   : > { %1047 = vmatpush2.msra.mxu0 %v705_v22  ;;  %1130 = vmatpush2.msra.mxu1 %v821_v23  ;;  %v698_v28 = vld [vmem:[%s2117_s23 + $0xb88] sm:$0xff]  ;;  %v697_v30 = vld [vmem:[%s2117_s23 + $0xb80] sm:$0xff] }
  0xe1   : > { %v814_v29 = vld [vmem:[%s2117_s23 + $0xf28] sm:$0xff]  ;;  %1048 = vmatprep.subr.mxu0 %v702_v24  ;;  %1131 = vmatprep.subr.mxu1 %v818_v25  ;;  %v813_v31 = vld [vmem:[%s2117_s23 + $0xf20] sm:$0xff]  ;;  %v2391_v24 = vadd.f32 %v304_v16, %v288_v15  ;;  %v507_v15 = vld [vmem:[%s2117_s23 + $0x590] sm:$0xff] }
  0xe2   : > { %1049 = vmatpush2.msra.mxu0 %v701_v26  ;;  %1132 = vmatpush2.msra.mxu1 %v817_v27  ;;  %v694_v32 = vld [vmem:[%s2117_s23 + $0xb68] sm:$0xff]  ;;  %v693_v34 = vld [vmem:[%s2117_s23 + $0xb60] sm:$0xff]  ;;  %v2394_v26 = vadd.f32 %v303_v19, %v287_v18  ;;  %v392_v27 = vld [vmem:[%s2117_s23 + $0x1f8] sm:$0xff] }
  0xe3   : > { %v810_v33 = vld [vmem:[%s2117_s23 + $0xf08] sm:$0xff]  ;;  %1050 = vmatprep.subr.mxu0 %v698_v28  ;;  %1133 = vmatprep.subr.mxu1 %v814_v29  ;;  %v809_v35 = vld [vmem:[%s2117_s23 + $0xf00] sm:$0xff]  ;;  %v391_v29 = vld [vmem:[%s2117_s23 + $0x1f0] sm:$0xff] }
  0xe4   : > { %1051 = vmatpush2.msra.mxu0 %v697_v30  ;;  %1134 = vmatpush2.msra.mxu1 %v813_v31  ;;  %v690_v36 = vld [vmem:[%s2117_s23 + $0xb48] sm:$0xff]  ;;  %v689_v38 = vld [vmem:[%s2117_s23 + $0xb40] sm:$0xff]  ;;  %v364_v16 = vld [vmem:[%s2117_s23 + $0x118] sm:$0xff] }
  0xe5   : > { %v806_v37 = vld [vmem:[%s2117_s23 + $0xee8] sm:$0xff]  ;;  %1052 = vmatprep.subr.mxu0 %v694_v32  ;;  %1135 = vmatprep.subr.mxu1 %v810_v33  ;;  %v805_v39 = vld [vmem:[%s2117_s23 + $0xee0] sm:$0xff]  ;;  %v388_v33 = vld [vmem:[%s2117_s23 + $0x1d8] sm:$0xff] }
  0xe6   : > { %1053 = vmatpush2.msra.mxu0 %v693_v34  ;;  %1136 = vmatpush2.msra.mxu1 %v809_v35  ;;  %v686_v40 = vld [vmem:[%s2117_s23 + $0xb28] sm:$0xff]  ;;  %v685_v42 = vld [vmem:[%s2117_s23 + $0xb20] sm:$0xff]  ;;  %v363_v18 = vld [vmem:[%s2117_s23 + $0x110] sm:$0xff] }
  0xe7   : > { %v802_v41 = vld [vmem:[%s2117_s23 + $0xec8] sm:$0xff]  ;;  %1054 = vmatprep.subr.mxu0 %v690_v36  ;;  %1137 = vmatprep.subr.mxu1 %v806_v37  ;;  %v801_v43 = vld [vmem:[%s2117_s23 + $0xec0] sm:$0xff]  ;;  %v387_v37 = vld [vmem:[%s2117_s23 + $0x1d0] sm:$0xff] }
  0xe8   : > { %v682_v44 = vld [vmem:[%s2117_s23 + $0xb08] sm:$0xff]  ;;  %1055 = vmatpush2.msra.mxu0 %v689_v38  ;;  %1138 = vmatpush2.msra.mxu1 %v805_v39  ;;  %v681_v46 = vld [vmem:[%s2117_s23 + $0xb00] sm:$0xff]  ;;  %v384_v39 = vld [vmem:[%s2117_s23 + $0x1b8] sm:$0xff] }
  0xe9   : > { %v798_v45 = vld [vmem:[%s2117_s23 + $0xea8] sm:$0xff]  ;;  %1056 = vmatprep.subr.mxu0 %v686_v40  ;;  %1139 = vmatprep.subr.mxu1 %v802_v41  ;;  %v797_v49 = vld [vmem:[%s2117_s23 + $0xea0] sm:$0xff]  ;;  %v503_v19 = vld [vmem:[%s2117_s23 + $0x570] sm:$0xff] }
  0xea   : > { %v290_v47 = vld [vmem:[#allocation2 + $0x48] sm:$0x3]  ;;  %v289_v50 = vld [vmem:[#allocation2 + $0x40] sm:$0x3]  ;;  %1057 = vmatpush2.msra.mxu0 %v685_v42  ;;  %1140 = vmatpush2.msra.mxu1 %v801_v43  ;;  %v383_v42 = vld [vmem:[%s2117_s23 + $0x1b0] sm:$0xff] }
  0xeb   : > { %v306_v48 = vld [vmem:[#allocation5 + $0x48] sm:$0x3]  ;;  %v305_v51 = vld [vmem:[#allocation5 + $0x40] sm:$0x3]  ;;  %1058 = vmatprep.subr.mxu0 %v682_v44  ;;  %1141 = vmatprep.subr.mxu1 %v798_v45  ;;  %v380_v44 = vld [vmem:[%s2117_s23 + $0x198] sm:$0xff] }
  0xec   : > { %v678_v52 = vld [vmem:[%s2117_s23 + $0xae8] sm:$0xff]  ;;  %v677_v54 = vld [vmem:[%s2117_s23 + $0xae0] sm:$0xff]  ;;  %v2363_v56 = vadd.f32 %v306_v48, %v290_v47  ;;  %1059 = vmatpush2.msra.mxu0 %v681_v46  ;;  %1142 = vmatpush2.msra.mxu1 %v797_v49  ;;  %v2366_v60 = vadd.f32 %v305_v51, %v289_v50  ;;  %v520_v47 = vld [vmem:[%s2117_s23 + $0x5f8] sm:$0xff] }
  0xed   : > { %v794_v53 = vld [vmem:[%s2117_s23 + $0xe88] sm:$0xff]  ;;  %v793_v55 = vld [vmem:[%s2117_s23 + $0xe80] sm:$0xff]  ;;  %1060 = vmatprep.subr.mxu0 %v678_v52  ;;  %1005 = vmatprep.mubr.f32.mxu1 %v2371_v2  ;;  %v379_v48 = vld [vmem:[%s2117_s23 + $0x190] sm:$0xff] }
  0xee   : > { %v674_v59 = vld [vmem:[%s2117_s23 + $0xac8] sm:$0xff]  ;;  %1143 = vmatprep.subr.mxu1 %v794_v53  ;;  %1061 = vmatpush2.msra.mxu0 %v677_v54  ;;  %v673_v0 = vld [vmem:[%s2117_s23 + $0xac0] sm:$0xff]  ;;  %v519_v49 = vld [vmem:[%s2117_s23 + $0x5f0] sm:$0xff] }
  0xef   : > { %v790_v63 = vld [vmem:[%s2117_s23 + $0xe68] sm:$0xff]  ;;  %1144 = vmatpush2.msra.mxu1 %v793_v55  ;;  %v789_v1 = vld [vmem:[%s2117_s23 + $0xe60] sm:$0xff]  ;;  %928 = vmatprep.mubr.f32.mxu0 %v2363_v56  ;;  %v376_v50 = vld [vmem:[%s2117_s23 + $0x178] sm:$0xff] }
  0xf0   : > { %1062 = vmatprep.subr.mxu0 %v674_v59  ;;  %v670_v3 = vld [vmem:[%s2117_s23 + $0xaa8] sm:$0xff]  ;;  %1145 = vmatprep.subr.mxu1 %v790_v63  ;;  %v669_v7 = vld [vmem:[%s2117_s23 + $0xaa0] sm:$0xff]  ;;  %v516_v53 = vld [vmem:[%s2117_s23 + $0x5d8] sm:$0xff] }
  0xf1   : > { %929 = vmatmul.mubr.f32.gmra.mxu0 %v2366_v60  ;;  %v786_v5 = vld [vmem:[%s2117_s23 + $0xe48] sm:$0xff]  ;;  %1146 = vmatpush2.msra.mxu1 %v789_v1  ;;  %v785_v9 = vld [vmem:[%s2117_s23 + $0xe40] sm:$0xff]  ;;  %v296_v55 = vld [vmem:[#allocation2 + $0x78] sm:$0x3] }
  0xf2   : > { %1063 = vmatpush2.msra.mxu0 %v673_v0  ;;  %v666_v12 = vld [vmem:[%s2117_s23 + $0xa88] sm:$0xff]  ;;  %v665_v14 = vld [vmem:[%s2117_s23 + $0xa80] sm:$0xff]  ;;  %1147 = vmatprep.subr.mxu1 %v786_v5  ;;  %v295_v59 = vld [vmem:[#allocation2 + $0x70] sm:$0x3] }
  0xf3   : > { %v782_v13 = vld [vmem:[%s2117_s23 + $0xe28] sm:$0xff]  ;;  %1064 = vmatprep.subr.mxu0 %v670_v3  ;;  %1006 = vmatmul.mubr.f32.gmra.mxu1 %v2375_v4  ;;  %v781_v17 = vld [vmem:[%s2117_s23 + $0xe20] sm:$0xff]  ;;  %v372_v0 = vld [vmem:[%s2117_s23 + $0x158] sm:$0xff]  ;;  %v2430_v3 = vadd.f32 %v312_v57, %v296_v55 }
  0xf4   : > { %1065 = vmatpush2.msra.mxu0 %v669_v7  ;;  %1148 = vmatpush2.msra.mxu1 %v785_v9  ;;  %v662_v20 = vld [vmem:[%s2117_s23 + $0xa68] sm:$0xff]  ;;  %v661_v22 = vld [vmem:[%s2117_s23 + $0xa60] sm:$0xff]  ;;  %v512_v1 = vld [vmem:[%s2117_s23 + $0x5b8] sm:$0xff]  ;;  %v2434_v7 = vadd.f32 %v311_v61, %v295_v59 }
  0xf5   : > { %v778_v21 = vld [vmem:[%s2117_s23 + $0xe08] sm:$0xff]  ;;  %1066 = vmatprep.subr.mxu0 %v666_v12  ;;  %1149 = vmatprep.subr.mxu1 %v782_v13  ;;  %v777_v23 = vld [vmem:[%s2117_s23 + $0xe00] sm:$0xff]  ;;  %v371_v5 = vld [vmem:[%s2117_s23 + $0x150] sm:$0xff] }
  0xf6   : > { %1067 = vmatpush2.msra.mxu0 %v665_v14  ;;  %1150 = vmatpush2.msra.mxu1 %v781_v17  ;;  %v658_v25 = vld [vmem:[%s2117_s23 + $0xa48] sm:$0xff]  ;;  %v657_v28 = vld [vmem:[%s2117_s23 + $0xa40] sm:$0xff]  ;;  %v511_v9 = vld [vmem:[%s2117_s23 + $0x5b0] sm:$0xff] }
  0xf7   : > { %1068 = vmatprep.subr.mxu0 %v662_v20  ;;  %1151 = vmatprep.subr.mxu1 %v778_v21  ;;  %v654_v30 = vld [vmem:[%s2117_s23 + $0xa28] sm:$0xff]  ;;  %v285_v34 = vld [vmem:[#allocation2 + $0x20] sm:$0xff]  ;;  %v368_v12 = vld [vmem:[%s2117_s23 + $0x138] sm:$0xff] }
  0xf8   : > { %1069 = vmatpush2.msra.mxu0 %v661_v22  ;;  %1152 = vmatpush2.msra.mxu1 %v777_v23  ;;  %v286_v31 = vld [vmem:[#allocation2 + $0x28] sm:$0xff]  ;;  %v301_v35 = vld [vmem:[#allocation5 + $0x20] sm:$0xff]  ;;  %v508_v13 = vld [vmem:[%s2117_s23 + $0x598] sm:$0xff] }
  0xf9   : > { %v302_v32 = vld [vmem:[#allocation5 + $0x28] sm:$0xff]  ;;  %1623 = vmatprep.mubr.msk.f32.mxu1 %vm851_vm0, %v2391_v24  ;;  %1070 = vmatprep.subr.mxu0 %v658_v25  ;;  %v653_v36 = vld [vmem:[%s2117_s23 + $0xa20] sm:$0xff]  ;;  %v2412_v43 = vadd.f32 %v301_v35, %v285_v34  ;;  %v367_v14 = vld [vmem:[%s2117_s23 + $0x130] sm:$0xff] }
  0xfa   : > { %1154 = vmatmul.mubr.f32.vlgmr.msra.gmra.mxu1 %v2394_v26  ;;  %1166 = vmatprep.subr.mxu1 %v392_v27  ;;  %v650_v38 = vld [vmem:[%s2117_s23 + $0xa08] sm:$0xff]  ;;  %v2408_v40 = vadd.f32 %v302_v32, %v286_v31  ;;  %v649_v41 = vld [vmem:[%s2117_s23 + $0xa00] sm:$0xff]  ;;  %v504_v17 = vld [vmem:[%s2117_s23 + $0x578] sm:$0xff] }
  0xfb   : > { %1071 = vmatpush2.msra.mxu0 %v657_v28  ;;  %1167 = vmatpush1.msra.mxu1 %v391_v29  ;;  %v294_v45 = vld [vmem:[#allocation2 + $0x68] sm:$0x3]  ;;  %v293_v51 = vld [vmem:[#allocation2 + $0x60] sm:$0x3]  ;;  %v360_v20 = vld [vmem:[%s2117_s23 + $0xf8] sm:$0xff] }
  0xfc   : > { %1072 = vmatprep.subr.mxu0 %v654_v30  ;;  %1168 = vmatprep.subr.mxu1 %v388_v33  ;;  %v310_v46 = vld [vmem:[#allocation5 + $0x68] sm:$0x3]  ;;  %v309_v52 = vld [vmem:[#allocation5 + $0x60] sm:$0x3]  ;;  %v500_v21 = vld [vmem:[%s2117_s23 + $0x558] sm:$0xff] }
  0xfd   : > { %1073 = vmatpush2.msra.mxu0 %v653_v36  ;;  %1169 = vmatpush1.msra.mxu1 %v387_v37  ;;  %v2422_v54 = vadd.f32 %v310_v46, %v294_v45  ;;  %v2426_v63 = vadd.f32 %v309_v52, %v293_v51  ;;  %v359_v22 = vld [vmem:[%s2117_s23 + $0xf0] sm:$0xff]  ;;  %v356_v25 = vld [vmem:[%s2117_s23 + $0xd8] sm:$0xff] }
  0xfe   : > { %1074 = vmatprep.subr.mxu0 %v650_v38  ;;  %1170 = vmatprep.subr.mxu1 %v384_v39  ;;  %v499_v23 = vld [vmem:[%s2117_s23 + $0x550] sm:$0xff]  ;;  %v496_v27 = vld [vmem:[%s2117_s23 + $0x538] sm:$0xff] }
  0xff   : > { %1075 = vmatpush2.msra.mxu0 %v649_v41  ;;  %1076 = vmatprep.mubr.f32.mxu0 %v2408_v40  ;;  %v355_v28 = vld [vmem:[%s2117_s23 + $0xd0] sm:$0xff]  ;;  %v352_v30 = vld [vmem:[%s2117_s23 + $0xb8] sm:$0xff] }
 0x100   : > { %1171 = vmatpush1.msra.mxu1 %v383_v42  ;;  %1077 = vmatmul.mubr.f32.vlgmr.msra.gmra.mxu0 %v2412_v43  ;;  %v495_v29 = vld [vmem:[%s2117_s23 + $0x530] sm:$0xff]  ;;  %v492_v31 = vld [vmem:[%s2117_s23 + $0x518] sm:$0xff] }
 0x101   : > { %1172 = vmatprep.subr.mxu1 %v380_v44  ;;  %1243 = vmatprep.subr.mxu0 %v520_v47  ;;  %v351_v32 = vld [vmem:[%s2117_s23 + $0xb0] sm:$0xff]  ;;  %v348_v34 = vld [vmem:[%s2117_s23 + $0x98] sm:$0xff] }
 0x102   : > { %1173 = vmatpush1.msra.mxu1 %v379_v48  ;;  %1244 = vmatpush1.msra.mxu0 %v519_v49  ;;  %v491_v33 = vld [vmem:[%s2117_s23 + $0x510] sm:$0xff]  ;;  %v488_v35 = vld [vmem:[%s2117_s23 + $0x4f8] sm:$0xff] }
 0x103   : > { %1174 = vmatprep.subr.mxu1 %v376_v50  ;;  %1245 = vmatprep.subr.mxu0 %v516_v53  ;;  %v347_v36 = vld [vmem:[%s2117_s23 + $0x90] sm:$0xff]  ;;  %v344_v38 = vld [vmem:[%s2117_s23 + $0x78] sm:$0xff] }
 0x104   : > { %1082 = vmatprep.mubr.f32.mxu0 %v2422_v54  ;;  %1175 = vmatpush1.msra.mxu1 %v375_v58  ;;  %v487_v37 = vld [vmem:[%s2117_s23 + $0x4f0] sm:$0xff]  ;;  %v484_v39 = vld [vmem:[%s2117_s23 + $0x4d8] sm:$0xff] }
 0x105   : > { %1246 = vmatpush1.msra.mxu0 %v515_v62  ;;  %1176 = vmatprep.subr.mxu1 %v372_v0  ;;  %v343_v41 = vld [vmem:[%s2117_s23 + $0x70] sm:$0xff]  ;;  %v340_v44 = vld [vmem:[%s2117_s23 + $0x58] sm:$0xff] }
 0x106   : > { %1083 = vmatmul.mubr.f32.gmra.mxu0 %v2426_v63  ;;  %1247 = vmatprep.subr.mxu0 %v512_v1  ;;  %v483_v42 = vld [vmem:[%s2117_s23 + $0x4d0] sm:$0xff]  ;;  %v480_v45 = vld [vmem:[%s2117_s23 + $0x4b8] sm:$0xff] }
 0x107   : > { %1624 = vmatprep.mubr.msk.f32.mxu1 %vm851_vm0, %v2430_v3  ;;  %1177 = vmatpush1.msra.mxu1 %v371_v5  ;;  %v339_v46 = vld [vmem:[%s2117_s23 + $0x50] sm:$0xff]  ;;  %v336_v48 = vld [vmem:[%s2117_s23 + $0x38] sm:$0xff] }
 0x108   : > { %1248 = vmatpush1.msra.mxu0 %v511_v9  ;;  %1160 = vmatmul.mubr.f32.gmra.mxu1 %v2434_v7  ;;  %v479_v47 = vld [vmem:[%s2117_s23 + $0x4b0] sm:$0xff]  ;;  %v476_v49 = vld [vmem:[%s2117_s23 + $0x498] sm:$0xff] }
 0x109   : > { %1178 = vmatprep.subr.mxu1 %v368_v12  ;;  %1249 = vmatprep.subr.mxu0 %v508_v13  ;;  %v335_v50 = vld [vmem:[%s2117_s23 + $0x30] sm:$0xff]  ;;  %v332_v52 = vld [vmem:[%s2117_s23 + $0x18] sm:$0xff] }
 0x10a   : > { %1179 = vmatpush1.msra.mxu1 %v367_v14  ;;  %1250 = vmatpush1.msra.mxu0 %v507_v15  ;;  %v475_v51 = vld [vmem:[%s2117_s23 + $0x490] sm:$0xff]  ;;  %v472_v53 = vld [vmem:[%s2117_s23 + $0x478] sm:$0xff] }
 0x10b   : > { %1180 = vmatprep.subr.mxu1 %v364_v16  ;;  %1251 = vmatprep.subr.mxu0 %v504_v17  ;;  %v331_v55 = vld [vmem:[%s2117_s23 + $0x10] sm:$0xff]  ;;  %v456_v58 = vld [vmem:[%s2117_s23 + $0x3f8] sm:$0xff] }
 0x10c   : > { %1181 = vmatpush1.msra.mxu1 %v363_v18  ;;  %1252 = vmatpush1.msra.mxu0 %v503_v19  ;;  %v471_v57 = vld [vmem:[%s2117_s23 + $0x470] sm:$0xff]  ;;  %v468_v59 = vld [vmem:[%s2117_s23 + $0x458] sm:$0xff] }
 0x10d   : > { %1182 = vmatprep.subr.mxu1 %v360_v20  ;;  %1253 = vmatprep.subr.mxu0 %v500_v21  ;;  %v455_v61 = vld [vmem:[%s2117_s23 + $0x3f0] sm:$0xff]  ;;  %v452_v0 = vld [vmem:[%s2117_s23 + $0x3d8] sm:$0xff] }
 0x10e   : > { %1183 = vmatpush1.msra.mxu1 %v359_v22  ;;  %1254 = vmatpush1.msra.mxu0 %v499_v23  ;;  %v467_v62 = vld [vmem:[%s2117_s23 + $0x450] sm:$0xff]  ;;  %v464_v1 = vld [vmem:[%s2117_s23 + $0x438] sm:$0xff] }
 0x10f   : > { %1184 = vmatprep.subr.mxu1 %v356_v25  ;;  %1255 = vmatprep.subr.mxu0 %v496_v27  ;;  %v451_v5 = vld [vmem:[%s2117_s23 + $0x3d0] sm:$0xff]  ;;  %v448_v12 = vld [vmem:[%s2117_s23 + $0x3b8] sm:$0xff] }
 0x110   : > { %1185 = vmatpush1.msra.mxu1 %v355_v28  ;;  %1256 = vmatpush1.msra.mxu0 %v495_v29  ;;  %v463_v9 = vld [vmem:[%s2117_s23 + $0x430] sm:$0xff]  ;;  %v460_v13 = vld [vmem:[%s2117_s23 + $0x418] sm:$0xff] }
 0x111   : > { %1186 = vmatprep.subr.mxu1 %v352_v30  ;;  %1257 = vmatprep.subr.mxu0 %v492_v31  ;;  %v447_v14 = vld [vmem:[%s2117_s23 + $0x3b0] sm:$0xff]  ;;  %v444_v16 = vld [vmem:[%s2117_s23 + $0x398] sm:$0xff] }
 0x112   : > { %1187 = vmatpush1.msra.mxu1 %v351_v32  ;;  %1258 = vmatpush1.msra.mxu0 %v491_v33  ;;  %v459_v15 = vld [vmem:[%s2117_s23 + $0x410] sm:$0xff]  ;;  %v584_v17 = vld [vmem:[%s2117_s23 + $0x7f8] sm:$0xff] }
 0x113   : > { %1188 = vmatprep.subr.mxu1 %v348_v34  ;;  %1259 = vmatprep.subr.mxu0 %v488_v35  ;;  %v443_v18 = vld [vmem:[%s2117_s23 + $0x390] sm:$0xff]  ;;  %v440_v20 = vld [vmem:[%s2117_s23 + $0x378] sm:$0xff] }
 0x114   : > { %1189 = vmatpush1.msra.mxu1 %v347_v36  ;;  %1260 = vmatpush1.msra.mxu0 %v487_v37  ;;  %v583_v19 = vld [vmem:[%s2117_s23 + $0x7f0] sm:$0xff]  ;;  %v580_v21 = vld [vmem:[%s2117_s23 + $0x7d8] sm:$0xff] }
 0x115   : > { %1190 = vmatprep.subr.mxu1 %v344_v38  ;;  %1261 = vmatprep.subr.mxu0 %v484_v39  ;;  %v439_v22 = vld [vmem:[%s2117_s23 + $0x370] sm:$0xff]  ;;  %v436_v25 = vld [vmem:[%s2117_s23 + $0x358] sm:$0xff] }
 0x116   : > { %1191 = vmatpush1.msra.mxu1 %v343_v41  ;;  %1262 = vmatpush1.msra.mxu0 %v483_v42  ;;  %v579_v23 = vld [vmem:[%s2117_s23 + $0x7d0] sm:$0xff]  ;;  %v576_v27 = vld [vmem:[%s2117_s23 + $0x7b8] sm:$0xff] }
 0x117   : > { %1192 = vmatprep.subr.mxu1 %v340_v44  ;;  %1263 = vmatprep.subr.mxu0 %v480_v45  ;;  %v435_v28 = vld [vmem:[%s2117_s23 + $0x350] sm:$0xff]  ;;  %v432_v30 = vld [vmem:[%s2117_s23 + $0x338] sm:$0xff] }
 0x118   : > { %1193 = vmatpush1.msra.mxu1 %v339_v46  ;;  %1264 = vmatpush1.msra.mxu0 %v479_v47  ;;  %v575_v29 = vld [vmem:[%s2117_s23 + $0x7b0] sm:$0xff]  ;;  %v572_v31 = vld [vmem:[%s2117_s23 + $0x798] sm:$0xff] }
 0x119   : > { %1194 = vmatprep.subr.mxu1 %v336_v48  ;;  %1265 = vmatprep.subr.mxu0 %v476_v49  ;;  %v431_v32 = vld [vmem:[%s2117_s23 + $0x330] sm:$0xff]  ;;  %v428_v34 = vld [vmem:[%s2117_s23 + $0x318] sm:$0xff] }
 0x11a   : > { %1195 = vmatpush1.msra.mxu1 %v335_v50  ;;  %1266 = vmatpush1.msra.mxu0 %v475_v51  ;;  %v571_v33 = vld [vmem:[%s2117_s23 + $0x790] sm:$0xff]  ;;  %v568_v35 = vld [vmem:[%s2117_s23 + $0x778] sm:$0xff] }
 0x11b   : > { %1196 = vmatprep.subr.mxu1 %v332_v52  ;;  %1267 = vmatprep.subr.mxu0 %v472_v53  ;;  %v427_v36 = vld [vmem:[%s2117_s23 + $0x310] sm:$0xff]  ;;  %v424_v38 = vld [vmem:[%s2117_s23 + $0x2f8] sm:$0xff] }
 0x11c   : > { %1197 = vmatpush1.msra.mxu1 %v331_v55  ;;  %1268 = vmatpush1.msra.mxu0 %v471_v57  ;;  %v567_v37 = vld [vmem:[%s2117_s23 + $0x770] sm:$0xff]  ;;  %v564_v39 = vld [vmem:[%s2117_s23 + $0x758] sm:$0xff] }
 0x11d   : > { %1198 = vmatprep.subr.mxu1 %v456_v58  ;;  %1269 = vmatprep.subr.mxu0 %v468_v59  ;;  %v423_v41 = vld [vmem:[%s2117_s23 + $0x2f0] sm:$0xff]  ;;  %v420_v44 = vld [vmem:[%s2117_s23 + $0x2d8] sm:$0xff] }
 0x11e   : > { %1199 = vmatpush2.msra.mxu1 %v455_v61  ;;  %1270 = vmatpush1.msra.mxu0 %v467_v62  ;;  %v563_v42 = vld [vmem:[%s2117_s23 + $0x750] sm:$0xff]  ;;  %v560_v45 = vld [vmem:[%s2117_s23 + $0x738] sm:$0xff] }
 0x11f   : > { %1200 = vmatprep.subr.mxu1 %v452_v0  ;;  %1271 = vmatprep.subr.mxu0 %v464_v1  ;;  %v419_v46 = vld [vmem:[%s2117_s23 + $0x2d0] sm:$0xff]  ;;  %v416_v48 = vld [vmem:[%s2117_s23 + $0x2b8] sm:$0xff] }
 0x120   : > { %1201 = vmatpush2.msra.mxu1 %v451_v5  ;;  %1272 = vmatpush1.msra.mxu0 %v463_v9  ;;  %v559_v47 = vld [vmem:[%s2117_s23 + $0x730] sm:$0xff]  ;;  %v556_v49 = vld [vmem:[%s2117_s23 + $0x718] sm:$0xff] }
 0x121   : > { %1202 = vmatprep.subr.mxu1 %v448_v12  ;;  %1273 = vmatprep.subr.mxu0 %v460_v13  ;;  %v415_v50 = vld [vmem:[%s2117_s23 + $0x2b0] sm:$0xff]  ;;  %v412_v52 = vld [vmem:[%s2117_s23 + $0x298] sm:$0xff] }
 0x122   : > { %1203 = vmatpush2.msra.mxu1 %v447_v14  ;;  %1274 = vmatpush1.msra.mxu0 %v459_v15  ;;  %v555_v51 = vld [vmem:[%s2117_s23 + $0x710] sm:$0xff]  ;;  %v552_v53 = vld [vmem:[%s2117_s23 + $0x6f8] sm:$0xff] }
 0x123   : > { %1204 = vmatprep.subr.mxu1 %v444_v16  ;;  %1275 = vmatprep.subr.mxu0 %v584_v17  ;;  %v411_v55 = vld [vmem:[%s2117_s23 + $0x290] sm:$0xff]  ;;  %v408_v58 = vld [vmem:[%s2117_s23 + $0x278] sm:$0xff] }
 0x124   : > { %1205 = vmatpush2.msra.mxu1 %v443_v18  ;;  %1276 = vmatpush2.msra.mxu0 %v583_v19  ;;  %v551_v57 = vld [vmem:[%s2117_s23 + $0x6f0] sm:$0xff]  ;;  %v548_v59 = vld [vmem:[%s2117_s23 + $0x6d8] sm:$0xff] }
 0x125   : > { %1206 = vmatprep.subr.mxu1 %v440_v20  ;;  %1277 = vmatprep.subr.mxu0 %v580_v21  ;;  %v407_v61 = vld [vmem:[%s2117_s23 + $0x270] sm:$0xff]  ;;  %v404_v0 = vld [vmem:[%s2117_s23 + $0x258] sm:$0xff] }
 0x126   : > { %1207 = vmatpush2.msra.mxu1 %v439_v22  ;;  %1278 = vmatpush2.msra.mxu0 %v579_v23  ;;  %v547_v62 = vld [vmem:[%s2117_s23 + $0x6d0] sm:$0xff]  ;;  %v544_v1 = vld [vmem:[%s2117_s23 + $0x6b8] sm:$0xff] }
 0x127   : > { %1208 = vmatprep.subr.mxu1 %v436_v25  ;;  %1279 = vmatprep.subr.mxu0 %v576_v27  ;;  %v403_v5 = vld [vmem:[%s2117_s23 + $0x250] sm:$0xff]  ;;  %v400_v12 = vld [vmem:[%s2117_s23 + $0x238] sm:$0xff] }
 0x128   : > { %1209 = vmatpush2.msra.mxu1 %v435_v28  ;;  %1280 = vmatpush2.msra.mxu0 %v575_v29  ;;  %v543_v9 = vld [vmem:[%s2117_s23 + $0x6b0] sm:$0xff]  ;;  %v540_v13 = vld [vmem:[%s2117_s23 + $0x698] sm:$0xff] }
 0x129   : > { %1210 = vmatprep.subr.mxu1 %v432_v30  ;;  %1281 = vmatprep.subr.mxu0 %v572_v31  ;;  %v399_v14 = vld [vmem:[%s2117_s23 + $0x230] sm:$0xff]  ;;  %v396_v16 = vld [vmem:[%s2117_s23 + $0x218] sm:$0xff] }
 0x12a   : > { %1211 = vmatpush2.msra.mxu1 %v431_v32  ;;  %1282 = vmatpush2.msra.mxu0 %v571_v33  ;;  %v539_v15 = vld [vmem:[%s2117_s23 + $0x690] sm:$0xff]  ;;  %v536_v17 = vld [vmem:[%s2117_s23 + $0x678] sm:$0xff] }
 0x12b   : > { %1212 = vmatprep.subr.mxu1 %v428_v34  ;;  %1283 = vmatprep.subr.mxu0 %v568_v35  ;;  %v395_v18 = vld [vmem:[%s2117_s23 + $0x210] sm:$0xff]  ;;  %v532_v20 = vld [vmem:[%s2117_s23 + $0x658] sm:$0xff] }
 0x12c   : > { %1213 = vmatpush2.msra.mxu1 %v427_v36  ;;  %1284 = vmatpush2.msra.mxu0 %v567_v37  ;;  %v535_v19 = vld [vmem:[%s2117_s23 + $0x670] sm:$0xff]  ;;  %v648_v21 = vld [vmem:[%s2117_s23 + $0x9f8] sm:$0xff] }
 0x12d   : > { %1214 = vmatprep.subr.mxu1 %v424_v38  ;;  %1285 = vmatprep.subr.mxu0 %v564_v39  ;;  %v531_v22 = vld [vmem:[%s2117_s23 + $0x650] sm:$0xff]  ;;  %v528_v25 = vld [vmem:[%s2117_s23 + $0x638] sm:$0xff] }
 0x12e   : > { %1215 = vmatpush2.msra.mxu1 %v423_v41  ;;  %1286 = vmatpush2.msra.mxu0 %v563_v42  ;;  %v647_v23 = vld [vmem:[%s2117_s23 + $0x9f0] sm:$0xff]  ;;  %v644_v27 = vld [vmem:[%s2117_s23 + $0x9d8] sm:$0xff] }
 0x12f   : > { %1216 = vmatprep.subr.mxu1 %v420_v44  ;;  %1287 = vmatprep.subr.mxu0 %v560_v45  ;;  %v527_v28 = vld [vmem:[%s2117_s23 + $0x630] sm:$0xff]  ;;  %v640_v30 = vld [vmem:[%s2117_s23 + $0x9b8] sm:$0xff] }
 0x130   : > { %1217 = vmatpush2.msra.mxu1 %v419_v46  ;;  %1288 = vmatpush2.msra.mxu0 %v559_v47  ;;  %v643_v29 = vld [vmem:[%s2117_s23 + $0x9d0] sm:$0xff]  ;;  %v636_v32 = vld [vmem:[%s2117_s23 + $0x998] sm:$0xff] }
 0x131   : > { %1218 = vmatprep.subr.mxu1 %v416_v48  ;;  %1289 = vmatprep.subr.mxu0 %v556_v49  ;;  %v639_v31 = vld [vmem:[%s2117_s23 + $0x9b0] sm:$0xff]  ;;  %v776_v33 = vld [vmem:[%s2117_s23 + $0xdf8] sm:$0xff] }
 0x132   : > { %1219 = vmatpush2.msra.mxu1 %v415_v50  ;;  %1290 = vmatpush2.msra.mxu0 %v555_v51  ;;  %v635_v34 = vld [vmem:[%s2117_s23 + $0x990] sm:$0xff]  ;;  %v632_v36 = vld [vmem:[%s2117_s23 + $0x978] sm:$0xff] }
 0x133   : > { %1220 = vmatprep.subr.mxu1 %v412_v52  ;;  %1291 = vmatprep.subr.mxu0 %v552_v53  ;;  %v775_v35 = vld [vmem:[%s2117_s23 + $0xdf0] sm:$0xff]  ;;  %v772_v37 = vld [vmem:[%s2117_s23 + $0xdd8] sm:$0xff] }
 0x134   : > { %1221 = vmatpush2.msra.mxu1 %v411_v55  ;;  %1292 = vmatpush2.msra.mxu0 %v551_v57  ;;  %v631_v38 = vld [vmem:[%s2117_s23 + $0x970] sm:$0xff]  ;;  %v768_v41 = vld [vmem:[%s2117_s23 + $0xdb8] sm:$0xff] }
 0x135   : > { %1222 = vmatprep.subr.mxu1 %v408_v58  ;;  %1293 = vmatprep.subr.mxu0 %v548_v59  ;;  %v771_v39 = vld [vmem:[%s2117_s23 + $0xdd0] sm:$0xff]  ;;  %v624_v44 = vld [vmem:[%s2117_s23 + $0x938] sm:$0xff] }
 0x136   : > { %1223 = vmatpush2.msra.mxu1 %v407_v61  ;;  %1294 = vmatpush2.msra.mxu0 %v547_v62  ;;  %v627_v42 = vld [vmem:[%s2117_s23 + $0x950] sm:$0xff]  ;;  %v764_v45 = vld [vmem:[%s2117_s23 + $0xd98] sm:$0xff] }
 0x137   : > { %1224 = vmatprep.subr.mxu1 %v404_v0  ;;  %1295 = vmatprep.subr.mxu0 %v544_v1  ;;  %v623_v46 = vld [vmem:[%s2117_s23 + $0x930] sm:$0xff]  ;;  %v620_v48 = vld [vmem:[%s2117_s23 + $0x918] sm:$0xff] }
 0x138   : > { %1225 = vmatpush2.msra.mxu1 %v403_v5  ;;  %1296 = vmatpush2.msra.mxu0 %v543_v9  ;;  %v763_v47 = vld [vmem:[%s2117_s23 + $0xd90] sm:$0xff]  ;;  %v760_v49 = vld [vmem:[%s2117_s23 + $0xd78] sm:$0xff] }
 0x139   : > { %1226 = vmatprep.subr.mxu1 %v400_v12  ;;  %1297 = vmatprep.subr.mxu0 %v540_v13  ;;  %v619_v50 = vld [vmem:[%s2117_s23 + $0x910] sm:$0xff]  ;;  %v616_v52 = vld [vmem:[%s2117_s23 + $0x8f8] sm:$0xff] }
 0x13a   : > { %1227 = vmatpush2.msra.mxu1 %v399_v14  ;;  %1298 = vmatpush2.msra.mxu0 %v539_v15  ;;  %v759_v51 = vld [vmem:[%s2117_s23 + $0xd70] sm:$0xff]  ;;  %v756_v53 = vld [vmem:[%s2117_s23 + $0xd58] sm:$0xff] }
 0x13b   : > { %1228 = vmatprep.subr.mxu1 %v396_v16  ;;  %1299 = vmatprep.subr.mxu0 %v536_v17  ;;  %v615_v55 = vld [vmem:[%s2117_s23 + $0x8f0] sm:$0xff]  ;;  %v612_v58 = vld [vmem:[%s2117_s23 + $0x8d8] sm:$0xff] }
 0x13c   : > { %1229 = vmatpush2.msra.mxu1 %v395_v18  ;;  %1230 = vmatprep.mubr.f32.mxu1 %v2249_v6  ;;  %v524_v6 = vld [vmem:[%s2117_s23 + $0x618] sm:$0xff]  ;;  %v755_v57 = vld [vmem:[%s2117_s23 + $0xd50] sm:$0xff] }
 0x13d   : > { %1300 = vmatpush2.msra.mxu0 %v535_v19  ;;  %1231 = vmatmul.mubr.f32.vlgmr.msra.gmra.mxu1 %v2255_v10  ;;  %v523_v10 = vld [vmem:[%s2117_s23 + $0x610] sm:$0xff]  ;;  %v752_v59 = vld [vmem:[%s2117_s23 + $0xd38] sm:$0xff] }
 0x13e   : > { %1301 = vmatprep.subr.mxu0 %v532_v20  ;;  %1320 = vmatprep.subr.mxu1 %v648_v21  ;;  %v611_v61 = vld [vmem:[%s2117_s23 + $0x8d0] sm:$0xff]  ;;  %v608_v0 = vld [vmem:[%s2117_s23 + $0x8b8] sm:$0xff] }
 0x13f   : > { %1302 = vmatpush2.msra.mxu0 %v531_v22  ;;  %1321 = vmatpush1.msra.mxu1 %v647_v23  ;;  %v751_v62 = vld [vmem:[%s2117_s23 + $0xd30] sm:$0xff]  ;;  %v748_v1 = vld [vmem:[%s2117_s23 + $0xd18] sm:$0xff] }
 0x140   : > { %1303 = vmatprep.subr.mxu0 %v528_v25  ;;  %1322 = vmatprep.subr.mxu1 %v644_v27  ;;  %v607_v5 = vld [vmem:[%s2117_s23 + $0x8b0] sm:$0xff]  ;;  %v604_v12 = vld [vmem:[%s2117_s23 + $0x898] sm:$0xff] }
 0x141   : > { %1304 = vmatpush2.msra.mxu0 %v527_v28  ;;  %1323 = vmatpush1.msra.mxu1 %v643_v29  ;;  %v747_v9 = vld [vmem:[%s2117_s23 + $0xd10] sm:$0xff]  ;;  %v744_v13 = vld [vmem:[%s2117_s23 + $0xcf8] sm:$0xff] }
 0x142   : > { %1305 = vmatprep.subr.mxu0 %v524_v6  ;;  %1324 = vmatprep.subr.mxu1 %v640_v30  ;;  %v603_v14 = vld [vmem:[%s2117_s23 + $0x890] sm:$0xff]  ;;  %v600_v16 = vld [vmem:[%s2117_s23 + $0x878] sm:$0xff] }
 0x143   : > { %1306 = vmatpush2.msra.mxu0 %v523_v10  ;;  %1307 = vmatprep.mubr.f32.mxu0 %v2252_v8  ;;  %v628_v8 = vld [vmem:[%s2117_s23 + $0x958] sm:$0xff]  ;;  %v743_v15 = vld [vmem:[%s2117_s23 + $0xcf0] sm:$0xff] }
 0x144   : > { %1325 = vmatpush1.msra.mxu1 %v639_v31  ;;  %1308 = vmatmul.mubr.f32.vlgmr.msra.gmra.mxu0 %v2257_v11  ;;  %v767_v11 = vld [vmem:[%s2117_s23 + $0xdb0] sm:$0xff]  ;;  %v740_v17 = vld [vmem:[%s2117_s23 + $0xcd8] sm:$0xff] }
 0x145   : > { %1326 = vmatprep.subr.mxu1 %v636_v32  ;;  %1397 = vmatprep.subr.mxu0 %v776_v33  ;;  %v599_v18 = vld [vmem:[%s2117_s23 + $0x870] sm:$0xff]  ;;  %v596_v20 = vld [vmem:[%s2117_s23 + $0x858] sm:$0xff] }
 0x146   : > { %1327 = vmatpush1.msra.mxu1 %v635_v34  ;;  %1398 = vmatpush1.msra.mxu0 %v775_v35  ;;  %v739_v19 = vld [vmem:[%s2117_s23 + $0xcd0] sm:$0xff]  ;;  %v736_v21 = vld [vmem:[%s2117_s23 + $0xcb8] sm:$0xff] }
 0x147   : > { %1328 = vmatprep.subr.mxu1 %v632_v36  ;;  %1399 = vmatprep.subr.mxu0 %v772_v37  ;;  %v595_v22 = vld [vmem:[%s2117_s23 + $0x850] sm:$0xff]  ;;  %v592_v25 = vld [vmem:[%s2117_s23 + $0x838] sm:$0xff] }
 0x148   : > { %1329 = vmatpush1.msra.mxu1 %v631_v38  ;;  %1400 = vmatpush1.msra.mxu0 %v771_v39  ;;  %v735_v23 = vld [vmem:[%s2117_s23 + $0xcb0] sm:$0xff]  ;;  %v732_v27 = vld [vmem:[%s2117_s23 + $0xc98] sm:$0xff] }
 0x149   : > { %1330 = vmatprep.subr.mxu1 %v628_v8  ;;  %1401 = vmatprep.subr.mxu0 %v768_v41  ;;  %v591_v28 = vld [vmem:[%s2117_s23 + $0x830] sm:$0xff]  ;;  %v588_v6 = vld [vmem:[%s2117_s23 + $0x818] sm:$0xff] }
 0x14a   : > { %1331 = vmatpush1.msra.mxu1 %v627_v42  ;;  %1402 = vmatpush1.msra.mxu0 %v767_v11  ;;  %v731_v29 = vld [vmem:[%s2117_s23 + $0xc90] sm:$0xff]  ;;  %v728_v30 = vld [vmem:[%s2117_s23 + $0xc78] sm:$0xff] }
 0x14b   : > { %1332 = vmatprep.subr.mxu1 %v624_v44  ;;  %1403 = vmatprep.subr.mxu0 %v764_v45  ;;  %v587_v10 = vld [vmem:[%s2117_s23 + $0x810] sm:$0xff]  ;;  %v712_v32 = vld [vmem:[%s2117_s23 + $0xbf8] sm:$0xff] }
 0x14c   : > { %1333 = vmatpush1.msra.mxu1 %v623_v46  ;;  %1404 = vmatpush1.msra.mxu0 %v763_v47  ;;  %v727_v31 = vld [vmem:[%s2117_s23 + $0xc70] sm:$0xff]  ;;  %v724_v33 = vld [vmem:[%s2117_s23 + $0xc58] sm:$0xff] }
 0x14d   : > { %1334 = vmatprep.subr.mxu1 %v620_v48  ;;  %1405 = vmatprep.subr.mxu0 %v760_v49  ;;  %v711_v34 = vld [vmem:[%s2117_s23 + $0xbf0] sm:$0xff]  ;;  %v708_v36 = vld [vmem:[%s2117_s23 + $0xbd8] sm:$0xff] }
 0x14e   : > { %1335 = vmatpush1.msra.mxu1 %v619_v50  ;;  %1406 = vmatpush1.msra.mxu0 %v759_v51  ;;  %v723_v35 = vld [vmem:[%s2117_s23 + $0xc50] sm:$0xff]  ;;  %v720_v37 = vld [vmem:[%s2117_s23 + $0xc38] sm:$0xff] }
 0x14f   : > { %1336 = vmatprep.subr.mxu1 %v616_v52  ;;  %1407 = vmatprep.subr.mxu0 %v756_v53  ;;  %v707_v38 = vld [vmem:[%s2117_s23 + $0xbd0] sm:$0xff]  ;;  %v704_v8 = vld [vmem:[%s2117_s23 + $0xbb8] sm:$0xff] }
 0x150   : > { %1337 = vmatpush1.msra.mxu1 %v615_v55  ;;  %1408 = vmatpush1.msra.mxu0 %v755_v57  ;;  %v719_v39 = vld [vmem:[%s2117_s23 + $0xc30] sm:$0xff]  ;;  %v716_v41 = vld [vmem:[%s2117_s23 + $0xc18] sm:$0xff] }
 0x151   : > { %1338 = vmatprep.subr.mxu1 %v612_v58  ;;  %1409 = vmatprep.subr.mxu0 %v752_v59  ;;  %v703_v42 = vld [vmem:[%s2117_s23 + $0xbb0] sm:$0xff]  ;;  %v700_v44 = vld [vmem:[%s2117_s23 + $0xb98] sm:$0xff] }
 0x152   : > { %1339 = vmatpush1.msra.mxu1 %v611_v61  ;;  %1410 = vmatpush1.msra.mxu0 %v751_v62  ;;  %v715_v11 = vld [vmem:[%s2117_s23 + $0xc10] sm:$0xff]  ;;  %v828_v45 = vld [vmem:[%s2117_s23 + $0xf98] sm:$0xff] }
 0x153   : > { %1340 = vmatprep.subr.mxu1 %v608_v0  ;;  %1411 = vmatprep.subr.mxu0 %v748_v1  ;;  %v699_v46 = vld [vmem:[%s2117_s23 + $0xb90] sm:$0xff]  ;;  %v696_v48 = vld [vmem:[%s2117_s23 + $0xb78] sm:$0xff] }
 0x154   : > { %1341 = vmatpush1.msra.mxu1 %v607_v5  ;;  %1412 = vmatpush1.msra.mxu0 %v747_v9  ;;  %v827_v47 = vld [vmem:[%s2117_s23 + $0xf90] sm:$0xff]  ;;  %v824_v49 = vld [vmem:[%s2117_s23 + $0xf78] sm:$0xff] }
 0x155   : > { %1342 = vmatprep.subr.mxu1 %v604_v12  ;;  %1413 = vmatprep.subr.mxu0 %v744_v13  ;;  %v695_v50 = vld [vmem:[%s2117_s23 + $0xb70] sm:$0xff]  ;;  %v692_v52 = vld [vmem:[%s2117_s23 + $0xb58] sm:$0xff] }
 0x156   : > { %1343 = vmatpush1.msra.mxu1 %v603_v14  ;;  %1414 = vmatpush1.msra.mxu0 %v743_v15  ;;  %v823_v51 = vld [vmem:[%s2117_s23 + $0xf70] sm:$0xff]  ;;  %v820_v53 = vld [vmem:[%s2117_s23 + $0xf58] sm:$0xff] }
 0x157   : > { %1344 = vmatprep.subr.mxu1 %v600_v16  ;;  %1415 = vmatprep.subr.mxu0 %v740_v17  ;;  %v691_v55 = vld [vmem:[%s2117_s23 + $0xb50] sm:$0xff]  ;;  %v688_v58 = vld [vmem:[%s2117_s23 + $0xb38] sm:$0xff] }
 0x158   : > { %1345 = vmatpush1.msra.mxu1 %v599_v18  ;;  %1416 = vmatpush1.msra.mxu0 %v739_v19  ;;  %v819_v57 = vld [vmem:[%s2117_s23 + $0xf50] sm:$0xff]  ;;  %v816_v59 = vld [vmem:[%s2117_s23 + $0xf38] sm:$0xff] }
 0x159   : > { %1346 = vmatprep.subr.mxu1 %v596_v20  ;;  %1417 = vmatprep.subr.mxu0 %v736_v21  ;;  %v687_v61 = vld [vmem:[%s2117_s23 + $0xb30] sm:$0xff]  ;;  %v684_v0 = vld [vmem:[%s2117_s23 + $0xb18] sm:$0xff] }
 0x15a   : > { %1347 = vmatpush1.msra.mxu1 %v595_v22  ;;  %1418 = vmatpush1.msra.mxu0 %v735_v23  ;;  %v815_v62 = vld [vmem:[%s2117_s23 + $0xf30] sm:$0xff]  ;;  %v812_v1 = vld [vmem:[%s2117_s23 + $0xf18] sm:$0xff] }
 0x15b   : > { %1348 = vmatprep.subr.mxu1 %v592_v25  ;;  %1419 = vmatprep.subr.mxu0 %v732_v27  ;;  %v683_v5 = vld [vmem:[%s2117_s23 + $0xb10] sm:$0xff]  ;;  %v680_v12 = vld [vmem:[%s2117_s23 + $0xaf8] sm:$0xff] }
 0x15c   : > { %1349 = vmatpush1.msra.mxu1 %v591_v28  ;;  %1420 = vmatpush1.msra.mxu0 %v731_v29  ;;  %v811_v9 = vld [vmem:[%s2117_s23 + $0xf10] sm:$0xff]  ;;  %v808_v13 = vld [vmem:[%s2117_s23 + $0xef8] sm:$0xff] }
 0x15d   : > { %1350 = vmatprep.subr.mxu1 %v588_v6  ;;  %1421 = vmatprep.subr.mxu0 %v728_v30  ;;  %v679_v14 = vld [vmem:[%s2117_s23 + $0xaf0] sm:$0xff]  ;;  %v676_v16 = vld [vmem:[%s2117_s23 + $0xad8] sm:$0xff] }
 0x15e   : > { %1351 = vmatpush1.msra.mxu1 %v587_v10  ;;  %1422 = vmatpush1.msra.mxu0 %v727_v31  ;;  %v807_v15 = vld [vmem:[%s2117_s23 + $0xef0] sm:$0xff]  ;;  %v804_v17 = vld [vmem:[%s2117_s23 + $0xed8] sm:$0xff] }
 0x15f   : > { %1352 = vmatprep.subr.mxu1 %v712_v32  ;;  %1423 = vmatprep.subr.mxu0 %v724_v33  ;;  %v675_v18 = vld [vmem:[%s2117_s23 + $0xad0] sm:$0xff]  ;;  %v672_v20 = vld [vmem:[%s2117_s23 + $0xab8] sm:$0xff] }
 0x160   : > { %1353 = vmatpush2.msra.mxu1 %v711_v34  ;;  %1424 = vmatpush1.msra.mxu0 %v723_v35  ;;  %v803_v19 = vld [vmem:[%s2117_s23 + $0xed0] sm:$0xff]  ;;  %v800_v21 = vld [vmem:[%s2117_s23 + $0xeb8] sm:$0xff] }
 0x161   : > { %1354 = vmatprep.subr.mxu1 %v708_v36  ;;  %1425 = vmatprep.subr.mxu0 %v720_v37  ;;  %v671_v22 = vld [vmem:[%s2117_s23 + $0xab0] sm:$0xff]  ;;  %v668_v25 = vld [vmem:[%s2117_s23 + $0xa98] sm:$0xff] }
 0x162   : > { %1355 = vmatpush2.msra.mxu1 %v707_v38  ;;  %1426 = vmatpush1.msra.mxu0 %v719_v39  ;;  %v799_v23 = vld [vmem:[%s2117_s23 + $0xeb0] sm:$0xff]  ;;  %v796_v27 = vld [vmem:[%s2117_s23 + $0xe98] sm:$0xff] }
 0x163   : > { %1356 = vmatprep.subr.mxu1 %v704_v8  ;;  %1427 = vmatprep.subr.mxu0 %v716_v41  ;;  %v667_v28 = vld [vmem:[%s2117_s23 + $0xa90] sm:$0xff]  ;;  %v664_v6 = vld [vmem:[%s2117_s23 + $0xa78] sm:$0xff] }
 0x164   : > { %1357 = vmatpush2.msra.mxu1 %v703_v42  ;;  %1428 = vmatpush1.msra.mxu0 %v715_v11  ;;  %v795_v29 = vld [vmem:[%s2117_s23 + $0xe90] sm:$0xff]  ;;  %v792_v30 = vld [vmem:[%s2117_s23 + $0xe78] sm:$0xff] }
 0x165   : > { %1358 = vmatprep.subr.mxu1 %v700_v44  ;;  %1435 = vmatprep.subr.mxu0 %v828_v45  ;;  %v663_v10 = vld [vmem:[%s2117_s23 + $0xa70] sm:$0xff]  ;;  %v660_v32 = vld [vmem:[%s2117_s23 + $0xa58] sm:$0xff] }
 0x166   : > { %1359 = vmatpush2.msra.mxu1 %v699_v46  ;;  %1436 = vmatpush2.msra.mxu0 %v827_v47  ;;  %v791_v31 = vld [vmem:[%s2117_s23 + $0xe70] sm:$0xff]  ;;  %v788_v33 = vld [vmem:[%s2117_s23 + $0xe58] sm:$0xff] }
 0x167   : > { %1360 = vmatprep.subr.mxu1 %v696_v48  ;;  %1437 = vmatprep.subr.mxu0 %v824_v49  ;;  %v659_v34 = vld [vmem:[%s2117_s23 + $0xa50] sm:$0xff]  ;;  %v656_v36 = vld [vmem:[%s2117_s23 + $0xa38] sm:$0xff] }
 0x168   : > { %1361 = vmatpush2.msra.mxu1 %v695_v50  ;;  %1438 = vmatpush2.msra.mxu0 %v823_v51  ;;  %v787_v35 = vld [vmem:[%s2117_s23 + $0xe50] sm:$0xff]  ;;  %v784_v37 = vld [vmem:[%s2117_s23 + $0xe38] sm:$0xff] }
 0x169   : > { %1362 = vmatprep.subr.mxu1 %v692_v52  ;;  %1439 = vmatprep.subr.mxu0 %v820_v53  ;;  %v655_v38 = vld [vmem:[%s2117_s23 + $0xa30] sm:$0xff]  ;;  %v780_v8 = vld [vmem:[%s2117_s23 + $0xe18] sm:$0xff] }
 0x16a   : > { %1363 = vmatpush2.msra.mxu1 %v691_v55  ;;  %1440 = vmatpush2.msra.mxu0 %v819_v57  ;;  %v783_v39 = vld [vmem:[%s2117_s23 + $0xe30] sm:$0xff] }
 0x16b   : > { %1364 = vmatprep.subr.mxu1 %v688_v58  ;;  %1441 = vmatprep.subr.mxu0 %v816_v59  ;;  %v779_v41 = vld [vmem:[%s2117_s23 + $0xe10] sm:$0xff] }
 0x16c   : > { %1365 = vmatpush2.msra.mxu1 %v687_v61  ;;  %1442 = vmatpush2.msra.mxu0 %v815_v62 }
 0x16d   : > { %1366 = vmatprep.subr.mxu1 %v684_v0  ;;  %1443 = vmatprep.subr.mxu0 %v812_v1 }
 0x16e   : > { %1367 = vmatpush2.msra.mxu1 %v683_v5  ;;  %1444 = vmatpush2.msra.mxu0 %v811_v9 }
 0x16f   : > { %1368 = vmatprep.subr.mxu1 %v680_v12  ;;  %1445 = vmatprep.subr.mxu0 %v808_v13 }
 0x170   : > { %1369 = vmatpush2.msra.mxu1 %v679_v14  ;;  %1446 = vmatpush2.msra.mxu0 %v807_v15 }
 0x171   : > { %1370 = vmatprep.subr.mxu1 %v676_v16  ;;  %1447 = vmatprep.subr.mxu0 %v804_v17 }
 0x172   : > { %1371 = vmatpush2.msra.mxu1 %v675_v18  ;;  %1448 = vmatpush2.msra.mxu0 %v803_v19 }
 0x173   : > { %1372 = vmatprep.subr.mxu1 %v672_v20  ;;  %1449 = vmatprep.subr.mxu0 %v800_v21 }
 0x174   : > { %1373 = vmatpush2.msra.mxu1 %v671_v22  ;;  %1450 = vmatpush2.msra.mxu0 %v799_v23 }
 0x175   : > { %1374 = vmatprep.subr.mxu1 %v668_v25  ;;  %1451 = vmatprep.subr.mxu0 %v796_v27 }
 0x176   : > { %1375 = vmatpush2.msra.mxu1 %v667_v28  ;;  %1452 = vmatpush2.msra.mxu0 %v795_v29 }
 0x177   : > { %1376 = vmatprep.subr.mxu1 %v664_v6  ;;  %1453 = vmatprep.subr.mxu0 %v792_v30 }
 0x178   : > { %1236 = vmatprep.mubr.f32.mxu1 %v2363_v56  ;;  %1377 = vmatpush2.msra.mxu1 %v663_v10  ;;  %v652_v56 = vld [vmem:[%s2117_s23 + $0xa18] sm:$0xff] }
 0x179   : > { %1454 = vmatpush2.msra.mxu0 %v791_v31  ;;  %1237 = vmatmul.mubr.f32.gmra.mxu1 %v2366_v60  ;;  %v651_v60 = vld [vmem:[%s2117_s23 + $0xa10] sm:$0xff] }
 0x17a   : > { %1378 = vmatprep.subr.mxu1 %v660_v32  ;;  %1455 = vmatprep.subr.mxu0 %v788_v33 }
 0x17b   : > { %1313 = vmatprep.mubr.f32.mxu0 %v2371_v2  ;;  %1379 = vmatpush2.msra.mxu1 %v659_v34  ;;  %v831_v2 = vlaneseq }
 0x17c   : > { %1456 = vmatpush2.msra.mxu0 %v787_v35  ;;  %1380 = vmatprep.subr.mxu1 %v656_v36 }
 0x17d   : > { %1314 = vmatmul.mubr.f32.gmra.mxu0 %v2375_v4  ;;  %1457 = vmatprep.subr.mxu0 %v784_v37  ;;  %v832_v4 = vshrl.u32 %v831_v2, 7 }
 0x17e   : > { %1381 = vmatpush2.msra.mxu1 %v655_v38  ;;  %1458 = vmatpush2.msra.mxu0 %v783_v39 }
 0x17f   : > { %1382 = vmatprep.subr.mxu1 %v652_v56  ;;  %1459 = vmatprep.subr.mxu0 %v780_v8  ;;  %v833_v42 = vsub.s32 0, %v832_v4  ;;  %v837_v11 = vsub.s32 1, %v832_v4  ;;  %v841_v20 = vsub.s32 2, %v832_v4  ;;  %v845_v22 = vsub.s32 3, %v832_v4 }
 0x180   : > { %1383 = vmatpush2.msra.mxu1 %v651_v60  ;;  %1384 = vmatprep.mubr.f32.mxu1 %v2408_v40  ;;  %v1001_v40 = vpop.f32.mrf.mxu1 }
 0x181   : > { %1460 = vmatpush2.msra.mxu0 %v779_v41  ;;  %1625 = vmatprep.mubr.msk.f32.mxu0 %vm851_vm0, %v2391_v24  ;;  %v829_v24 = vld [vmem:[%s248_s10] sm:$0xf] }
 0x182   : > { %1385 = vmatmul.mubr.f32.vlgmr.msra.gmra.mxu1 %v2412_v43  ;;  %1462 = vmatmul.mubr.f32.vlgmr.msra.gmra.mxu0 %v2394_v26  ;;  %v924_v43 = vpop.f32.mrf.mxu0  ;;  %v1003_v26 = vpop.f32.mrf.mxu1  ;;  %v834_v44 = vrot.slane %v829_v24, %v833_v42  ;;  %v838_v46 = vrot.slane %v829_v24, %v837_v11  ;;  %v842_v25 = vrot.slane %v829_v24, %v841_v20 }
 0x183   : > { %1390 = vmatprep.mubr.f32.mxu1 %v2422_v54  ;;  %1626 = vmatprep.mubr.msk.f32.mxu0 %vm851_vm0, %v2430_v3  ;;  %v846_v29 = vrot.slane %v829_v24, %v845_v22 }
 0x184   : > { %v926_v54 = vpop.f32.mrf.mxu0  ;;  %v925_v47 = vadd.f32 %v924_v43, %v834_v44 }
 0x185   : > { %v927_v48 = vadd.f32 %v926_v54, %v838_v46 }
 0x186   : > { %1391 = vmatmul.mubr.f32.gmra.mxu1 %v2426_v63  ;;  %1468 = vmatmul.mubr.f32.gmra.mxu0 %v2434_v7  ;;  %v1002_v49 = vadd.f32 %v1001_v40, %v925_v47 }
 0x187   : > { %v1004_v52 = vadd.f32 %v1003_v26, %v927_v48 }
 0x1b1   : > { %v930_v3 = vpop.f32.mrf.mxu0 }
 0x1b2   : > { %v931_v53 = vadd.f32 %v930_v3, %v834_v44 }
 0x1b3   : > { %v1007_v45 = vpop.f32.mrf.mxu1  ;;  %v932_v7 = vpop.f32.mrf.mxu0 }
 0x1b4   : > { %v933_v58 = vadd.f32 %v932_v7, %v838_v46  ;;  %v1008_v0 = vadd.f32 %v1007_v45, %v931_v53 }
 0x1b5   : > { %v1009_v63 = vpop.f32.mrf.mxu1 }
 0x1b6   : > { %v1010_v9 = vadd.f32 %v1009_v63, %v933_v58 }
 0x1ba   : > { %v1155_v50 = vpop.f32.mrf.mxu1 }
 0x1bc   : > { %v1157_v62 = vpop.f32.mrf.mxu1 }
 0x1c0   : > { %v1078_v51 = vpop.f32.mrf.mxu0 }
 0x1c1   : > { %v1079_v55 = vadd.f32 %v1078_v51, %v1002_v49 }
 0x1c2   : > { %v1080_v57 = vpop.f32.mrf.mxu0 }
 0x1c3   : > { %v1156_v59 = vadd.f32 %v1155_v50, %v1079_v55  ;;  %v1081_v61 = vadd.f32 %v1080_v57, %v1004_v52 }
 0x1c5   : > { %1474 = vst [vmem:[%s2693_s12] sm:$0xff] %v1156_v59  ;;  %v1158_v1 = vadd.f32 %v1157_v62, %v1081_v61 }
 0x1c6   : > { %v1084_v5 = vpop.f32.mrf.mxu0 }
 0x1c7   : > { %1475 = vst [vmem:[%s2693_s12 + $0x8] sm:$0xff] %v1158_v1  ;;  %v1085_v12 = vadd.f32 %v1084_v5, %v1008_v0 }
 0x1c8   : > { %v1086_v13 = vpop.f32.mrf.mxu0  ;;  %v1161_v14 = vpop.f32.mrf.mxu1 }
 0x1c9   : > { %v1087_v15 = vadd.f32 %v1086_v13, %v1010_v9  ;;  %v1162_v16 = vadd.f32 %v1161_v14, %v1085_v12 }
 0x1ca   : > { %v1163_v17 = vpop.f32.mrf.mxu1 }
 0x1cb   : > { %1478 = vst [vmem:[%s2693_s12 + $0x20] sm:$0x3] %v1162_v16  ;;  %v1164_v18 = vadd.f32 %v1163_v17, %v1087_v15 }
 0x1cd   : > { %1479 = vst [vmem:[%s2693_s12 + $0x28] sm:$0x3] %v1164_v18 }
 0x1fd   : > { %v1232_v19 = vpop.f32.mrf.mxu1 }
 0x1fe   : > { %v1233_v30 = vadd.f32 %v1232_v19, %v842_v25 }
 0x1ff   : > { %v1234_v23 = vpop.f32.mrf.mxu1 }
 0x200   : > { %v1235_v32 = vadd.f32 %v1234_v23, %v846_v29 }
 0x204   : > { %v1309_v21 = vpop.f32.mrf.mxu0 }
 0x205   : > { %v1310_v33 = vadd.f32 %v1309_v21, %v1233_v30 }
 0x206   : > { %v1311_v27 = vpop.f32.mrf.mxu0 }
 0x207   : > { %v1312_v37 = vadd.f32 %v1311_v27, %v1235_v32 }
 0x239   : > { %v1238_v28 = vpop.f32.mrf.mxu1 }
 0x23a   : > { %v1239_v34 = vadd.f32 %v1238_v28, %v842_v25 }
 0x23b   : > { %v1240_v31 = vpop.f32.mrf.mxu1 }
 0x23c   : > { %v1241_v38 = vadd.f32 %v1240_v31, %v846_v29 }
 0x23d   : > { %v1315_v6 = vpop.f32.mrf.mxu0 }
 0x23e   : > { %v1316_v60 = vadd.f32 %v1315_v6, %v1239_v34 }
 0x23f   : > { %v1317_v10 = vpop.f32.mrf.mxu0 }
 0x240   : > { %v1318_v42 = vadd.f32 %v1317_v10, %v1241_v38 }
 0x242   : > { %v1386_v35 = vpop.f32.mrf.mxu1  ;;  %v1463_v36 = vpop.f32.mrf.mxu0 }
 0x243   : > { %v1387_v39 = vadd.f32 %v1386_v35, %v1310_v33 }
 0x244   : > { %v1388_v56 = vpop.f32.mrf.mxu1  ;;  %v1465_v8 = vpop.f32.mrf.mxu0 }
 0x245   : > { %v1464_v41 = vadd.f32 %v1463_v36, %v1387_v39  ;;  %v1389_v2 = vadd.f32 %v1388_v56, %v1312_v37 }
 0x246   : > { %v1392_v4 = vpop.f32.mrf.mxu1  ;;  %v1469_v40 = vpop.f32.mrf.mxu0 }
 0x247   : > { %1476 = vst [vmem:[%s2693_s12 + $0x10] sm:$0xff] %v1464_v41  ;;  %v1466_v24 = vadd.f32 %v1465_v8, %v1389_v2  ;;  %v1393_v43 = vadd.f32 %v1392_v4, %v1316_v60 }
 0x248   : > { %v1394_v11 = vpop.f32.mrf.mxu1  ;;  %v1471_v54 = vpop.f32.mrf.mxu0 }
 0x249   : > { %1477 = vst [vmem:[%s2693_s12 + $0x18] sm:$0xff] %v1466_v24  ;;  %v1470_v26 = vadd.f32 %v1469_v40, %v1393_v43  ;;  %v1395_v44 = vadd.f32 %v1394_v11, %v1318_v42 }
 0x24b   : > { %1480 = vst [vmem:[%s2693_s12 + $0x30] sm:$0x3] %v1470_v26  ;;  %v1472_v45 = vadd.f32 %v1471_v54, %v1395_v44 }
 0x24d   : > { %1481 = vst [vmem:[%s2693_s12 + $0x38] sm:$0x3] %v1472_v45 }
 0x24e   : > { %1837 = shalt.err (!%p1834_p12)
}
 0x24f   : > { %s1838_s2 = scalar_lea.hbm %s2708_s5, 1024  ;;  %s1842_s11 = scalar_lea.hbm %s2757_s4, 2048 }
 0x250   : > { %p1839_p8 = scmp.ne.s32.totalorder %s2708_s5, %s1838_s2  ;;  %p1843_p4 = scmp.lt.s32.totalorder %s2708_s5, %s2757_s4 }
 0x251   : > { %p1844_p13 = scmp.lt.s32.totalorder %s1842_s11, %s1838_s2 }
 0x252   : > { %p1840_p2 = pnand %p1839_p8, %p2785_p7 }
 0x253   : > { %p1845_p6 = por %p1844_p13, %p1843_p4 }
 0x254   : > { %p1841_p11 = pneg %p1840_p2 }
 0x256   : > { %p1846_p0 = pnand %p1845_p6, %p1841_p11 }
 0x258   : > { %1849 = shalt.err (!%p1846_p0)
}
 0x259   : > { %s1907_s10 = smov 512   ;;  %s1908_s14 = smov 1024  }
 0x25a   : > { %s1909_s12 = smov 32  }
 0x25b   : > { %1649 = dma.vmem_to_hbm [thread:$0]  (%p2785_p7), %s2702_s30, 1024, %s2708_s5, %s1483_s9, %s1907_s10, %s1908_s14, %s1909_s12  }
 0x25c PF: > { %s1511_s7 = sand.u32 1, %s1884_s15   ;;  %p2786_p3 = scmp.ne.s32.totalorder %s2770_s28, 0 }
 0x25d   : > { %p2787_p9 = scmp.ge.s32.totalorder %s1896_s18, 2  ;;  %s1512_s6 = scalar_lea.sflag [#allocation4], %s1511_s7 }
 0x25f   : > { %p1666_p10 = pnand %p2787_p9, %p2786_p3 }
 0x261   : > { %p1667_p1 = pneg %p1666_p10 }
 0x263   : > { %1879 = dma.done.wait (%p1667_p1), %s1512_s6, 1024  }
 0x264   : > { %1881 = vsyncadd (%p1667_p1), %s1512_s6, 4294966272  ;;  %p16_p5 = scmp.ge.s32.totalorder %s1960_s21, 4   ;;  %s2788_s15 = smov %s1888_s16 }
 0x265   : > { %s2789_s16 = smov %s1892_s17  ;;  %s2790_s17 = smov %s1972_s24 }
 0x266   : > { %s2791_s18 = smov %s1960_s21  ;;  %18 = sbr.rel (!%p16_p5) target bundleno = 8 (0x8), region = 99 }
 0x26b   :  { %1517 = vsyncpa [#allocation3], 1 }
 0x26c   :  { %1519 = vsyncpa [#allocation3 + $0x1], 1 }
 0x26d   :  { %1520 = vsyncpa [#allocation6], 1 }
 0x26e   :  { %1521 = vsyncpa [#allocation4], 1 }
 0x26f   :  { %1523 = vsyncpa [#allocation4 + $0x1], 1 }

</bundles_post_ra>
